<compile_context>
chip_gen: v6e
topology: v6e:2x2x1
jax: 0.10.0
libtpu: 0.0.40
codegen_flags: <defaults>
</compile_context>

<pallas_src>
import jax
import jax.numpy as jnp
from jax.experimental import pallas as pl
from jax.experimental.pallas import tpu as pltpu


# ---------------------------------------------------------------------------
# Kernel 1: conv1/conv2/conv3 (1x1) + folded BN + relu (conv1/2 only) +
#           running global max over points of the RAW conv3 output.
# Grid: (n_splits, B, n_chunks_per_split).  The (1,1,1024,1) output block is
# resident across the (innermost, "arbitrary") chunk axis and holds the
# running max.  conv3's bias+ReLU are hoisted past the pool (applied later).
# ---------------------------------------------------------------------------
def stn3d_conv_pool_kernel(x_ref,
                           w1_ref, t1_ref,
                           w2_ref, t2_ref,
                           w3_ref,
                           feat_ref):
    n = pl.program_id(2)

    x = x_ref[0]                                        # (C, chunk) f32

    # conv1 + bn1 (folded) + relu — bf16 MXU (K = channel), f32 accumulate.
    h = jnp.dot(w1_ref[...], x.astype(jnp.bfloat16),
                preferred_element_type=jnp.float32) + t1_ref[...]
    h = jnp.maximum(h, 0.0)                             # (64, chunk)

    # conv2 + bn2 (folded) + relu.
    h = jnp.dot(w2_ref[...], h.astype(jnp.bfloat16),
                preferred_element_type=jnp.float32) + t2_ref[...]
    h = jnp.maximum(h, 0.0)                             # (128, chunk)

    # conv3 RAW (bias + relu hoisted past the max-pool — exact).
    h = jnp.dot(w3_ref[...], h.astype(jnp.bfloat16),
                preferred_element_type=jnp.float32)     # (1024, chunk)

    # Chunk-local max over points (XLU lane reduce), then running max.
    cmax = jnp.max(h, axis=1, keepdims=True)            # (1024, 1)

    @pl.when(n == 0)
    def _():
        feat_ref[0, 0] = cmax

    @pl.when(n > 0)
    def _():
        feat_ref[0, 0] = jnp.maximum(feat_ref[0, 0], cmax)


# ---------------------------------------------------------------------------
# Kernel 2: hoisted conv3 epilogue (+t3, relu) on the pooled feature, then the
# batched FC head (fc1/fc2/fc3 + folded BN + relu), M = B.
# fc3 is padded to 128 output lanes; its bias includes the flattened identity.
# ---------------------------------------------------------------------------
def stn3d_fc_kernel(f_ref, t3_ref,
                    wf1_ref, tf1_ref,
                    wf2_ref, tf2_ref,
                    wf3_ref, bf3_ref,
                    o_ref):
    # conv3 bias + relu, applied to the pooled (B, 1024) row only.
    f = jnp.maximum(f_ref[...] + t3_ref[...], 0.0)      # (B, 1024)
    g = jnp.dot(f.astype(jnp.bfloat16), wf1_ref[...],
                preferred_element_type=jnp.float32) + tf1_ref[...]
    g = jnp.maximum(g, 0.0)                             # (B, 512)
    g = jnp.dot(g.astype(jnp.bfloat16), wf2_ref[...],
                preferred_element_type=jnp.float32) + tf2_ref[...]
    g = jnp.maximum(g, 0.0)                             # (B, 256)
    o_ref[...] = jnp.dot(g.astype(jnp.bfloat16), wf3_ref[...],
                         preferred_element_type=jnp.float32) + bf3_ref[...]


# ---------------------------------------------------------------------------
# Parameter / config helpers.
# ---------------------------------------------------------------------------
def _fold_bn(bias, gamma, beta, mean, var, eps=1e-5):
    """BatchNorm1d (eval) + preceding bias -> per-channel (scale, shift)."""
    scale = gamma / jnp.sqrt(var + eps)
    shift = (bias - mean) * scale + beta
    return scale, shift


def _round_up(a, m):
    return ((a + m - 1) // m) * m


def _hw_chunk_defaults():
    """(max_chunk, vmem_limit_bytes) chosen per TPU generation."""
    try:
        vmem = int(pltpu.get_tpu_info().vmem_capacity_bytes)
    except Exception:
        vmem = 0
    if vmem >= 100 * 2 ** 20:        # v5e / v6e: 128 MiB physical VMEM
        return 4096, 64 * 2 ** 20
    return 2048, 40 * 2 ** 20        # v7x (64 MiB) or unknown: conservative


def init_params(channel, key):
    def nrm(k, shape, scale=0.05):
        return scale * jax.random.normal(k, shape, dtype=jnp.float32)

    ks = jax.random.split(key, 24)
    p = {}
    # conv weights stored (C_in, C_out); fc weights stored (in, out).
    p["w1"], p["b1"] = nrm(ks[0], (channel, 64)), nrm(ks[1], (64,))
    p["w2"], p["b2"] = nrm(ks[2], (64, 128)), nrm(ks[3], (128,))
    p["w3"], p["b3"] = nrm(ks[4], (128, 1024)), nrm(ks[5], (1024,))
    p["wf1"], p["bf1"] = nrm(ks[6], (1024, 512)), nrm(ks[7], (512,))
    p["wf2"], p["bf2"] = nrm(ks[8], (512, 256)), nrm(ks[9], (256,))
    p["wf3"], p["bf3"] = nrm(ks[10], (256, 9)), nrm(ks[11], (9,))

    def bn(kg, kb, km, kv, c):
        gamma = 1.0 + nrm(kg, (c,))
        beta = nrm(kb, (c,))
        mean = nrm(km, (c,))
        var = 1.0 + 0.1 * jax.random.uniform(kv, (c,), dtype=jnp.float32)
        return gamma, beta, mean, var

    p["bn1"] = bn(ks[12], ks[13], ks[14], ks[15], 64)
    p["bn2"] = bn(ks[16], ks[17], ks[18], ks[19], 128)
    p["bn3"] = bn(ks[20], ks[21], ks[22], ks[23], 1024)
    ks2 = jax.random.split(jax.random.fold_in(key, 1), 8)
    p["bn4"] = bn(ks2[0], ks2[1], ks2[2], ks2[3], 512)
    p["bn5"] = bn(ks2[4], ks2[5], ks2[6], ks2[7], 256)
    return p


# ---------------------------------------------------------------------------
# Forward wrapper.
# ---------------------------------------------------------------------------
def stn3d_forward(x_ncw, params, *, max_chunk=None, n_splits=2):
    """x_ncw: (B, channel, N) float32, same layout as the PyTorch module."""
    B, C, N = x_ncw.shape
    x = x_ncw.astype(jnp.float32)

    hw_chunk, vmem_limit = _hw_chunk_defaults()
    if max_chunk is None:
        max_chunk = hw_chunk

    # Fold eval-mode BN (scale into weights, shift as additive bias).
    s1, t1 = _fold_bn(params["b1"], *params["bn1"])
    s2, t2 = _fold_bn(params["b2"], *params["bn2"])
    s3, t3 = _fold_bn(params["b3"], *params["bn3"])
    sf1, tf1 = _fold_bn(params["bf1"], *params["bn4"])
    sf2, tf2 = _fold_bn(params["bf2"], *params["bn5"])

    # Feature-major conv weights (C_out, C_in) with BN scale folded in, bf16.
    w1t = (params["w1"] * s1[None, :]).T.astype(jnp.bfloat16)       # (64, C)
    w2t = (params["w2"] * s2[None, :]).T.astype(jnp.bfloat16)       # (128, 64)
    w3t = (params["w3"] * s3[None, :]).T.astype(jnp.bfloat16)       # (1024, 128)
    wf1 = (params["wf1"] * sf1[None, :]).astype(jnp.bfloat16)       # (1024, 512)
    wf2 = (params["wf2"] * sf2[None, :]).astype(jnp.bfloat16)       # (512, 256)

    # fc3 padded to 128 output lanes; bias + flattened 3x3 identity folded in.
    wf3p = jnp.zeros((256, 128), jnp.float32).at[:, :9].set(params["wf3"])
    wf3p = wf3p.astype(jnp.bfloat16)
    bf3p = jnp.zeros((1, 128), jnp.float32).at[0, :9].set(
        params["bf3"] + jnp.eye(3, dtype=jnp.float32).reshape(9))

    t1c = t1[:, None]      # (64, 1)   broadcast across point lanes
    t2c = t2[:, None]      # (128, 1)
    t3r = t3[None, :]      # (1, 1024) hoisted conv3 epilogue (used in FC kernel)
    tf1r = tf1[None, :]
    tf2r = tf2[None, :]

    # --- Point-axis chunking: chunk is a multiple of 128; N is edge-padded. ---
    n_chunks = max(1, -(-N // max_chunk))            # ceil(N / max_chunk)
    n_chunks = _round_up(n_chunks, n_splits)
    chunk = _round_up(-(-N // n_chunks), 128)
    n_pad = chunk * n_chunks
    npc = n_chunks // n_splits                       # chunks per split
    if n_pad != N:
        # Edge-replicate the last point: exact under the global max-pool.
        x = jnp.pad(x, ((0, 0), (0, 0), (0, n_pad - N)), mode="edge")

    def const(a):
        return pl.BlockSpec(a.shape, lambda s, b, n: (0, 0))

    feat_parts = pl.pallas_call(
        stn3d_conv_pool_kernel,
        out_shape=jax.ShapeDtypeStruct((n_splits, B, 1024, 1), jnp.float32),
        grid_spec=pltpu.PrefetchScalarGridSpec(
            num_scalar_prefetch=0,
            grid=(n_splits, B, npc),
            in_specs=[pl.BlockSpec((1, C, chunk),
                                   lambda s, b, n: (b, 0, s * npc + n)),
                      const(w1t), const(t1c),
                      const(w2t), const(t2c),
                      const(w3t)],
            out_specs=pl.BlockSpec((1, 1, 1024, 1),
                                   lambda s, b, n: (s, b, 0, 0)),
        ),
        compiler_params=pltpu.CompilerParams(
            dimension_semantics=("parallel", "parallel", "arbitrary"),
            vmem_limit_bytes=vmem_limit),
    )(x, w1t, t1c, w2t, t2c, w3t)

    # Combine the per-split partial maxes (tiny: n_splits * B * 1024 floats).
    feat = jnp.max(feat_parts[..., 0], axis=0)                       # (B, 1024)

    def full(a):
        return pl.BlockSpec(a.shape, lambda i: (0, 0))

    # TODO(synk): for very small B this second launch could be folded into
    # plain XLA; kept as a Pallas kernel so the whole forward stays in Pallas.
    out_pad = pl.pallas_call(
        stn3d_fc_kernel,
        out_shape=jax.ShapeDtypeStruct((B, 128), jnp.float32),
        grid_spec=pltpu.PrefetchScalarGridSpec(
            num_scalar_prefetch=0,
            grid=(1,),
            in_specs=[full(feat), full(t3r),
                      full(wf1), full(tf1r),
                      full(wf2), full(tf2r),
                      full(wf3p), full(bf3p)],
            out_specs=pl.BlockSpec((B, 128), lambda i: (0, 0)),
        ),
        compiler_params=pltpu.CompilerParams(
            dimension_semantics=("arbitrary",),
            vmem_limit_bytes=vmem_limit),
    )(feat, t3r, wf1, tf1r, wf2, tf2r, wf3p, bf3p)

    return out_pad[:, :9].reshape(B, 3, 3)


# ---------------------------------------------------------------------------
# Pure-JAX f32 reference of the PyTorch forward (eval-mode BN).
# ---------------------------------------------------------------------------
def stn3d_reference(x_ncw, params):
    x = jnp.transpose(x_ncw, (0, 2, 1)).astype(jnp.float32)        # (B, N, C)
    s1, t1 = _fold_bn(params["b1"], *params["bn1"])
    s2, t2 = _fold_bn(params["b2"], *params["bn2"])
    s3, t3 = _fold_bn(params["b3"], *params["bn3"])
    sf1, tf1 = _fold_bn(params["bf1"], *params["bn4"])
    sf2, tf2 = _fold_bn(params["bf2"], *params["bn5"])
    h = jnp.maximum(x @ params["w1"] * s1 + t1, 0.0)
    h = jnp.maximum(h @ params["w2"] * s2 + t2, 0.0)
    h = jnp.maximum(h @ params["w3"] * s3 + t3, 0.0)
    f = jnp.max(h, axis=1)                                          # (B, 1024)
    g = jnp.maximum(f @ params["wf1"] * sf1 + tf1, 0.0)
    g = jnp.maximum(g @ params["wf2"] * sf2 + tf2, 0.0)
    out = g @ params["wf3"] + params["bf3"][None, :]
    out = out + jnp.eye(3, dtype=jnp.float32).reshape(1, 9)
    return out.reshape(-1, 3, 3)


if __name__ == "__main__":
    key = jax.random.PRNGKey(0)
    kx, kp = jax.random.split(key)

    # Awkward N (not a multiple of 128) exercises the edge-padding path;
    # small max_chunk forces several chunks per split so both the running-max
    # accumulator and the 2-way point-axis split are exercised.
    B, channel, N = 2, 3, 500
    x = jax.random.normal(kx, (B, channel, N), dtype=jnp.float32)   # NCW layout
    params = init_params(channel, kp)

    out = stn3d_forward(x, params, max_chunk=128)
    out = jax.block_until_ready(out)

    ref = stn3d_reference(x, params)
    assert out.shape == (B, 3, 3)
    # bf16 MXU inputs -> looser tolerance vs the f32 reference.
    assert bool(jnp.allclose(out, ref, atol=3e-2, rtol=3e-2)), "mismatch vs JAX reference"

    print("KERNEL_OK")
</pallas_src>

<mosaic_0001>
module attributes {stable_mosaic.version = 11 : i64} {
  func.func @stn3d_conv_pool_kernel(%arg0: i32, %arg1: i32, %arg2: i32, %arg3: memref<1x3x128xf32, #tpu.memory_space<vmem>>, %arg4: memref<64x3xbf16, #tpu.memory_space<vmem>>, %arg5: memref<64x1xf32, #tpu.memory_space<vmem>>, %arg6: memref<128x64xbf16, #tpu.memory_space<vmem>>, %arg7: memref<128x1xf32, #tpu.memory_space<vmem>>, %arg8: memref<1024x128xbf16, #tpu.memory_space<vmem>>, %arg9: memref<1x1x1024x1xf32, #tpu.memory_space<vmem>>) attributes {dimension_semantics = [#tpu.dimension_semantics<parallel>, #tpu.dimension_semantics<parallel>, #tpu.dimension_semantics<arbitrary>], iteration_bounds = array<i64: 2, 2, 2>, scalar_prefetch = 0 : i64, scratch_operands = 0 : i64, tpu.core_type = #tpu.core_type<tc>, window_params = [{transform_indices = @transform_0, window_bounds = array<i64: 1, 3, 128>}, {pipeline_mode = #tpu.pipeline_mode<synchronous>, transform_indices = @transform_1, window_bounds = array<i64: 64, 3>}, {pipeline_mode = #tpu.pipeline_mode<synchronous>, transform_indices = @transform_2, window_bounds = array<i64: 64, 1>}, {pipeline_mode = #tpu.pipeline_mode<synchronous>, transform_indices = @transform_3, window_bounds = array<i64: 128, 64>}, {pipeline_mode = #tpu.pipeline_mode<synchronous>, transform_indices = @transform_4, window_bounds = array<i64: 128, 1>}, {pipeline_mode = #tpu.pipeline_mode<synchronous>, transform_indices = @transform_5, window_bounds = array<i64: 1024, 128>}, {transform_indices = @transform_6, window_bounds = array<i64: 1, 1, 1024, 1>}]} {
    %c0 = arith.constant 0 : index
    %c0_0 = arith.constant 0 : index
    %c0_1 = arith.constant 0 : index
    %0 = vector.load %arg3[%c0, %c0_0, %c0_1] : memref<1x3x128xf32, #tpu.memory_space<vmem>>, vector<1x3x128xf32>
    %1 = vector.shape_cast %0 : vector<1x3x128xf32> to vector<3x128xf32>
    %c0_2 = arith.constant 0 : index
    %c0_3 = arith.constant 0 : index
    %2 = vector.load %arg4[%c0_2, %c0_3] : memref<64x3xbf16, #tpu.memory_space<vmem>>, vector<64x3xbf16>
    %3 = arith.truncf %1 : vector<3x128xf32> to vector<3x128xbf16>
    %cst = arith.constant dense<0.000000e+00> : vector<64x128xf32>
    %4 = tpu.matmul %2, %3, %cst {dimension_numbers = #tpu.dot_dimension_numbers<[1], [0], [0], [1], [0, 0, 1, 1], [], []>} : vector<64x3xbf16>, vector<3x128xbf16>, vector<64x128xf32> -> vector<64x128xf32>
    %c0_4 = arith.constant 0 : index
    %c0_5 = arith.constant 0 : index
    %5 = vector.load %arg5[%c0_4, %c0_5] : memref<64x1xf32, #tpu.memory_space<vmem>>, vector<64x1xf32>
    %6 = vector.broadcast %5 : vector<64x1xf32> to vector<64x128xf32>
    %7 = arith.addf %4, %6 : vector<64x128xf32>
    %cst_6 = arith.constant 0.000000e+00 : f32
    %8 = vector.broadcast %cst_6 : f32 to vector<64x128xf32>
    %9 = arith.maximumf %7, %8 : vector<64x128xf32>
    %c0_7 = arith.constant 0 : index
    %c0_8 = arith.constant 0 : index
    %10 = vector.load %arg6[%c0_7, %c0_8] : memref<128x64xbf16, #tpu.memory_space<vmem>>, vector<128x64xbf16>
    %11 = arith.truncf %9 : vector<64x128xf32> to vector<64x128xbf16>
    %cst_9 = arith.constant dense<0.000000e+00> : vector<128x128xf32>
    %12 = tpu.matmul %10, %11, %cst_9 {dimension_numbers = #tpu.dot_dimension_numbers<[1], [0], [0], [1], [0, 0, 1, 1], [], []>} : vector<128x64xbf16>, vector<64x128xbf16>, vector<128x128xf32> -> vector<128x128xf32>
    %c0_10 = arith.constant 0 : index
    %c0_11 = arith.constant 0 : index
    %13 = vector.load %arg7[%c0_10, %c0_11] : memref<128x1xf32, #tpu.memory_space<vmem>>, vector<128x1xf32>
    %14 = vector.broadcast %13 : vector<128x1xf32> to vector<128x128xf32>
    %15 = arith.addf %12, %14 : vector<128x128xf32>
    %cst_12 = arith.constant 0.000000e+00 : f32
    %16 = vector.broadcast %cst_12 : f32 to vector<128x128xf32>
    %17 = arith.maximumf %15, %16 : vector<128x128xf32>
    %c0_13 = arith.constant 0 : index
    %c0_14 = arith.constant 0 : index
    %18 = vector.load %arg8[%c0_13, %c0_14] : memref<1024x128xbf16, #tpu.memory_space<vmem>>, vector<1024x128xbf16>
    %19 = arith.truncf %17 : vector<128x128xf32> to vector<128x128xbf16>
    %cst_15 = arith.constant dense<0.000000e+00> : vector<1024x128xf32>
    %20 = tpu.matmul %18, %19, %cst_15 {dimension_numbers = #tpu.dot_dimension_numbers<[1], [0], [0], [1], [0, 0, 1, 1], [], []>} : vector<1024x128xbf16>, vector<128x128xbf16>, vector<1024x128xf32> -> vector<1024x128xf32>
    %cst_16 = arith.constant dense<0xFF800000> : vector<1024xf32>
    %21 = vector.multi_reduction <maximumf>, %20, %cst_16 [1] : vector<1024x128xf32> to vector<1024xf32>
    %22 = vector.shape_cast %21 : vector<1024xf32> to vector<1024x1xf32>
    %c0_i32 = arith.constant 0 : i32
    %23 = arith.cmpi eq, %arg2, %c0_i32 : i32
    %24 = arith.extui %23 : i1 to i32
    %c0_i32_17 = arith.constant 0 : i32
    %25 = arith.cmpi ne, %24, %c0_i32_17 : i32
    scf.if %25 {
      %c0_20 = arith.constant 0 : index
      %c0_21 = arith.constant 0 : index
      %c0_22 = arith.constant 0 : index
      %c0_23 = arith.constant 0 : index
      %29 = vector.load %arg9[%c0_20, %c0_21, %c0_22, %c0_23] : memref<1x1x1024x1xf32, #tpu.memory_space<vmem>>, vector<1x1x1024x1xf32>
      %30 = vector.shape_cast %29 : vector<1x1x1024x1xf32> to vector<1024x1xf32>
      %31 = vector.shape_cast %22 : vector<1024x1xf32> to vector<1x1x1024x1xf32>
      tpu.vector_store %arg9[%c0_20, %c0_21, %c0_22, %c0_23], %31 {strides = array<i32>} : memref<1x1x1024x1xf32, #tpu.memory_space<vmem>>, vector<1x1x1024x1xf32>,
    } else {
    }
    %c0_i32_18 = arith.constant 0 : i32
    %26 = arith.cmpi sgt, %arg2, %c0_i32_18 : i32
    %27 = arith.extui %26 : i1 to i32
    %c0_i32_19 = arith.constant 0 : i32
    %28 = arith.cmpi ne, %27, %c0_i32_19 : i32
    scf.if %28 {
      %c0_20 = arith.constant 0 : index
      %c0_21 = arith.constant 0 : index
      %c0_22 = arith.constant 0 : index
      %c0_23 = arith.constant 0 : index
      %29 = vector.load %arg9[%c0_20, %c0_21, %c0_22, %c0_23] : memref<1x1x1024x1xf32, #tpu.memory_space<vmem>>, vector<1x1x1024x1xf32>
      %30 = vector.shape_cast %29 : vector<1x1x1024x1xf32> to vector<1024x1xf32>
      %31 = arith.maximumf %30, %22 : vector<1024x1xf32>
      %c0_24 = arith.constant 0 : index
      %c0_25 = arith.constant 0 : index
      %c0_26 = arith.constant 0 : index
      %c0_27 = arith.constant 0 : index
      %32 = vector.load %arg9[%c0_24, %c0_25, %c0_26, %c0_27] : memref<1x1x1024x1xf32, #tpu.memory_space<vmem>>, vector<1x1x1024x1xf32>
      %33 = vector.shape_cast %32 : vector<1x1x1024x1xf32> to vector<1024x1xf32>
      %34 = vector.shape_cast %31 : vector<1024x1xf32> to vector<1x1x1024x1xf32>
      tpu.vector_store %arg9[%c0_24, %c0_25, %c0_26, %c0_27], %34 {strides = array<i32>} : memref<1x1x1024x1xf32, #tpu.memory_space<vmem>>, vector<1x1x1024x1xf32>,
    } else {
    }
    return
  }
  func.func @transform_0(%arg0: i32, %arg1: i32, %arg2: i32) -> (i32, i32, i32) {
    %c2_i32 = arith.constant 2 : i32
    %0 = arith.muli %arg0, %c2_i32 : i32
    %1 = arith.addi %0, %arg2 : i32
    %c0_i32 = arith.constant 0 : i32
    %c0_i32_0 = arith.constant 0 : i32
    return %arg1, %c0_i32, %1 : i32, i32, i32
  }
  func.func @transform_1(%arg0: i32, %arg1: i32, %arg2: i32) -> (i32, i32) {
    %c0_i32 = arith.constant 0 : i32
    %c0_i32_0 = arith.constant 0 : i32
    %c0_i32_1 = arith.constant 0 : i32
    return %c0_i32, %c0_i32_0 : i32, i32
  }
  func.func @transform_2(%arg0: i32, %arg1: i32, %arg2: i32) -> (i32, i32) {
    %c0_i32 = arith.constant 0 : i32
    %c0_i32_0 = arith.constant 0 : i32
    %c0_i32_1 = arith.constant 0 : i32
    return %c0_i32, %c0_i32_0 : i32, i32
  }
  func.func @transform_3(%arg0: i32, %arg1: i32, %arg2: i32) -> (i32, i32) {
    %c0_i32 = arith.constant 0 : i32
    %c0_i32_0 = arith.constant 0 : i32
    %c0_i32_1 = arith.constant 0 : i32
    return %c0_i32, %c0_i32_0 : i32, i32
  }
  func.func @transform_4(%arg0: i32, %arg1: i32, %arg2: i32) -> (i32, i32) {
    %c0_i32 = arith.constant 0 : i32
    %c0_i32_0 = arith.constant 0 : i32
    %c0_i32_1 = arith.constant 0 : i32
    return %c0_i32, %c0_i32_0 : i32, i32
  }
  func.func @transform_5(%arg0: i32, %arg1: i32, %arg2: i32) -> (i32, i32) {
    %c0_i32 = arith.constant 0 : i32
    %c0_i32_0 = arith.constant 0 : i32
    %c0_i32_1 = arith.constant 0 : i32
    return %c0_i32, %c0_i32_0 : i32, i32
  }
  func.func @transform_6(%arg0: i32, %arg1: i32, %arg2: i32) -> (i32, i32, i32, i32) {
    %c0_i32 = arith.constant 0 : i32
    %c0_i32_0 = arith.constant 0 : i32
    %c0_i32_1 = arith.constant 0 : i32
    return %arg0, %arg1, %c0_i32, %c0_i32_0 : i32, i32, i32, i32
  }
}

</mosaic_0001>

<bundles_post_ra>
// kernel: tpu_custom_call.1
= control target key start
LH: loop header
LB: loop body
LE: loop exit
PB: predicated region body
PF: predicated region fallthrough
CT: control target
= control target key end

     0   :  { %11 = vsyncpa [#allocation3], 0  ;;  %s3406_s21 = smov 0   ;;  %s3408_s22 = smov 0   ;;  %s4805_s0 = inlined_call_operand.vmem [shape: f32[2,3,512], index: 0, kind: input, shape index: {}]   ;;  %s4806_s1 = inlined_call_operand.vmem [shape: bf16[64,3], index: 1, kind: input, shape index: {}]   ;;  %s4807_s2 = inlined_call_operand.vmem [shape: f32[64,1], index: 2, kind: input, shape index: {}]   ;;  %s4808_s3 = inlined_call_operand.vmem [shape: bf16[128,64], index: 3, kind: input, shape index: {}]   ;;  %s4809_s4 = inlined_call_operand.vmem [shape: f32[128,1], index: 4, kind: input, shape index: {}]   ;;  %s4810_s5 = inlined_call_operand.hbm [shape: bf16[1024,128], index: 5, kind: input, shape index: {}]   ;;  %s4811_s6 = inlined_call_operand.vmem [shape: f32[2,2,1024,1], index: 6, kind: output, shape index: {}]  }
   0x1   :  { %s3410_s23 = smov 0   ;;  %s3412_s24 = smov 0  }
   0x2   :  { %s3414_s25 = smov 0   ;;  %s3416_s26 = smov 0  }
   0x3   :  { %s3418_s27 = smov 0  }
   0x4 LB: > { %s2741_s28 = sadd.s32 4294967295, %s3364_s27   ;;  %s29_s29 = sadd.s32 1, %s3352_s24  ;;  %s3364_s27 = sphi %s3418_s27, %s17_s27   ;;  %s3360_s26 = sphi %s3416_s26, %s5048_s26   ;;  %s3356_s25 = sphi %s3414_s25, %s5047_s25   ;;  %s3352_s24 = sphi %s3412_s24, %s5046_s24   ;;  %s3348_s23 = sphi %s3410_s23, %s5045_s23   ;;  %s3344_s22 = sphi %s3408_s22, %s5044_s22   ;;  %s3340_s21 = sphi %s3406_s21, %s5043_s21  }
   0x5   : > { %p30_p0 = scmp.ge.s32.totalorder %s29_s29, 2  ;;  %s32_s30 = sadd.s32 1, %s3356_s25 }
   0x6   : > { %s36_s7 = sadd.s32 1, %s3360_s26  ;;  %p2745_p1 = scmp.ge.s32.totalorder %s3364_s27, 1 }
   0x7   : > { %s5050_s29 = smov (%p30_p0, %s29_s29), 0  ;;  %s5052_s30 = smov (!%p30_p0, %s32_s30), %s3356_s25 }
   0x8   : > { %p206_p2 = scmp.lt.s32.totalorder %s3364_s27, 9  ;;  %p34_p3 = scmp.ge.s32.totalorder %s5052_s30, 2 }
   0x9   : > { %p3450_p4 = scmp.eq.s32.totalorder %s2741_s28, 0  ;;  %s3366_s10 = smov [#allocation2]  }
   0xa   : > { %p3454_p5 = pnand %p2745_p1, %p206_p2  ;;  %s5054_s30 = smov (%p34_p3, %s5052_s30), 0 }
   0xb   : > { %s5056_s7 = smov (!%p34_p3, %s36_s7), %s3360_s26  ;;  %s230_s11 = sshll.u32 %s3366_s10, 4  ;;  %s231_s11 = int_to_ptr.vmem [resolvable:$true] %s230_s11 }
   0xc   : > { %p3135_p6 = pneg %p3454_p5  ;;  %p38_p7 = scmp.ge.s32.totalorder %s5056_s7, 2 }
   0xd   : > { %s3291_s13 = scalar_lea.vmem %s231_s11, 8192  ;;  %p3299_p13 = scmp.lt.s32.totalorder %s231_s11, %s231_s11 }
   0xe   : > { %p3465_p8 = pnand %p3450_p4, %p3135_p6  ;;  %s5058_s7 = smov (%p38_p7, %s5056_s7), 0 }
   0xf   : > { %p3292_p10 = scmp.ne.s32.totalorder %s231_s11, %s3291_s13  ;;  %p3300_p0 = scmp.lt.s32.totalorder %s3291_s13, %s3291_s13 }
  0x10   : > { %p3282_p9 = pneg %p3465_p8 }
  0x11   : > { %p3301_p1 = por %p3300_p0, %p3299_p13 }
  0x12   : > { %p3294_p11 = pnand %p3292_p10, %p3282_p9 }
  0x14   : > { %p3295_p12 = pneg %p3294_p11 }
  0x16   : > { %p3302_p2 = pnand %p3301_p1, %p3295_p12 }
  0x18   : > { %3305 = shalt.err (!%p3302_p2)
}
  0x19   : > { %s3367_s14 = smov 64   ;;  %s3368_s15 = smov 4  }
  0x1a   : > { %3138 = dma.hbm_to_vmem [thread:$0]  (!%p3465_p8), %s4810_s5, 8192, %s231_s11, [#allocation3], %s3367_s14, %s3367_s14, %s3368_s15  }
  0x1b   : > { %261 = sbr.rel (%p3454_p5) target bundleno = 1282 (0x502), region = 44 }
  0x20   : > { %3335 = dma.done.wait (%p3450_p4), [#allocation3], 8192  }
  0x21   : > { %3337 = vsyncadd (%p3450_p4), [#allocation3], 4294959104  ;;  %s2750_s18 = sshll.u32 %s3348_s23, 1  ;;  %p302_p3 = scmp.lt.s32.totalorder %s3344_s22, 1  ;;  %v3369_v0 = vmov 0   ;;  %vm413_vm0 = vcmask 1040384  }
  0x22   : > { %s301_s19 = sadd.s32 %s3340_s21, %s2750_s18  ;;  %p312_p6 = scmp.lt.s32.totalorder %s3348_s23, 1  ;;  %3202 = vset.pattern.permute.xlu0 %v3369_v0  ;;  %3203 = vset.pattern.permute.xlu1 %v3369_v0  ;;  %vm414_vm1 = vcmask 1041408   ;;  %vm400_vm2 = vcmask 23552   ;;  %v3370_v1 = vmov 65535   ;;  %v3204_v3 = vld [vmem:[%s4806_s1] sm:$0xff]   ;;  %v338_v7 = vld [vmem:[%s4807_s2 + $0x30] sm:$0xff] }
  0x23   : > { %s5060_s22 = smov (!%p302_p3, %s3344_s22), 1  ;;  %p304_p5 = scmp.lt.s32.totalorder %s301_s19, 3  ;;  %v415_v2 = vsel %vm413_vm0, 4294967295, %v3370_v1  ;;  %2939 = vmatprep.mubr.msk.bf16.mxu0 %vm400_vm2, %v3204_v3  ;;  %372 = vperm.xlu0 %3202, %v338_v7   ;;  %v336_v8 = vld [vmem:[%s4807_s2 + $0x20] sm:$0xff]  ;;  %v339_v10 = vld [vmem:[%s4807_s2 + $0x38] sm:$0xff]  ;;  %v337_v11 = vld [vmem:[%s4807_s2 + $0x28] sm:$0xff] }
  0x24   : > { %s2751_s20 = sshll.u32 %s5060_s22, 2  ;;  %s2753_s28 = sshll.u32 %s5060_s22, 7  ;;  %v416_v5 = vsel %vm414_vm1, %v415_v2, 0  ;;  %362 = vperm.xlu1 %3203, %v336_v8   ;;  %v3205_v12 = vld [vmem:[%s4806_s1 + $0x8] sm:$0xff]   ;;  %v3206_v13 = vld [vmem:[%s4806_s1 + $0x10] sm:$0xff]   ;;  %v335_v15 = vld [vmem:[%s4807_s2 + $0x18] sm:$0xff] }
  0x25   : > { %s5062_s19 = smov (!%p304_p5, %s301_s19), 3  ;;  %s5064_s23 = smov (!%p312_p6, %s3348_s23), 1  ;;  %v334_v14 = vld [vmem:[%s4807_s2 + $0x10] sm:$0xff]  ;;  %v332_v16 = vld [vmem:[%s4807_s2] sm:$0xff]  ;;  %v333_v17 = vld [vmem:[%s4807_s2 + $0x8] sm:$0xff]  ;;  %vm649_vm3 = vcmask 523264  }
  0x26   : > { %s307_s8 = sadd.s32 %s2751_s20, %s5062_s19  ;;  %s2754_s12 = sshll.u32 %s5064_s23, 8  ;;  %v3207_v18 = vld [vmem:[%s4806_s1 + $0x18] sm:$0xff]   ;;  %v527_v19 = vld [vmem:[%s4809_s4 + $0x70] sm:$0xff]  ;;  %v525_v21 = vld [vmem:[%s4809_s4 + $0x60] sm:$0xff] }
  0x27   : > { %s2752_s11 = sshll.u32 %s307_s8, 2  ;;  %s318_s16 = sadd.s32 %s2754_s12, %s2753_s28  ;;  %377 = vperm.xlu0 %3202, %v339_v10   ;;  %v528_v20 = vld [vmem:[%s4809_s4 + $0x78] sm:$0xff]  ;;  %v526_v22 = vld [vmem:[%s4809_s4 + $0x68] sm:$0xff]  ;;  %v523_v23 = vld [vmem:[%s4809_s4 + $0x50] sm:$0xff] }
  0x28   : > { %s309_s15 = scalar_lea.vmem %s4805_s0, %s2752_s11  ;;  %s2755_s22 = sshll.u32 %s318_s16, 3  ;;  %367 = vperm.xlu1 %3203, %v337_v11   ;;  %v524_v24 = vld [vmem:[%s4809_s4 + $0x58] sm:$0xff]  ;;  %v521_v25 = vld [vmem:[%s4809_s4 + $0x40] sm:$0xff]  ;;  %v522_v26 = vld [vmem:[%s4809_s4 + $0x48] sm:$0xff] }
  0x29   : > { %v322_v4 = vld [vmem:[%s309_s15] sm:$0x7]  ;;  %s3500_s19 = scalar_lea.vmem %s4811_s6, %s2755_s22  ;;  %v519_v27 = vld [vmem:[%s4809_s4 + $0x30] sm:$0xff]  ;;  %v520_v28 = vld [vmem:[%s4809_s4 + $0x38] sm:$0xff]  ;;  %p2844_p4 = scmp.ne.s32.totalorder %s3340_s21, 0 }
  0x2a   : > { %v331_v6 = vpack.c.bf16 %v322_v4, %v322_v4  ;;  %v517_v29 = vld [vmem:[%s4809_s4 + $0x20] sm:$0xff]  ;;  %v518_v30 = vld [vmem:[%s4809_s4 + $0x28] sm:$0xff]  ;;  %v515_v31 = vld [vmem:[%s4809_s4 + $0x10] sm:$0xff] }
  0x2b   : > { %352 = vperm.xlu0 %3202, %v334_v14   ;;  %v516_v32 = vld [vmem:[%s4809_s4 + $0x18] sm:$0xff]  ;;  %v513_v33 = vld [vmem:[%s4809_s4] sm:$0xff]  ;;  %v514_v34 = vld [vmem:[%s4809_s4 + $0x8] sm:$0xff] }
  0x2c   : > { %v418_v9 = vand.u32 %v416_v5, %v331_v6  ;;  %357 = vperm.xlu1 %3203, %v335_v15   ;;  %v3208_v35 = vld [vmem:[%s4808_s3] sm:$0xff]   ;;  %v3209_v8 = vld [vmem:[%s4808_s3 + $0x8] sm:$0xff]   ;;  %v3211_v10 = vld [vmem:[%s4808_s3 + $0x18] sm:$0xff]  }
  0x2d   : > { %2955 = vmatprep.mubr.msk.bf16.mxu1 %vm649_vm3, %v3208_v35  ;;  %v3212_v11 = vld [vmem:[%s4808_s3 + $0x20] sm:$0xff]   ;;  %v3215_v14 = vld [vmem:[%s4808_s3 + $0x38] sm:$0xff]  }
  0x2e   : > { %2937 = vmatprep.subr.bf16.mxu0 %v418_v9  ;;  %v3216_v15 = vld [vmem:[#allocation2] sm:$0xff]  }
  0x2f   : > { %2938 = vmatpush3.bf16.msra.mxu0 %v418_v9  ;;  %342 = vperm.xlu0 %3202, %v332_v16   ;;  %v3210_v9 = vld [vmem:[%s4808_s3 + $0x10] sm:$0xff]  }
  0x30   : > { %347 = vperm.xlu1 %3203, %v333_v17   ;;  %v3217_v16 = vld [vmem:[#allocation2 + $0x110] sm:$0xff]  }
  0x32   : > { %2940 = vmatmul.mubr.msk.bf16.vlgmr.msra.gmra.mxu0 %vm400_vm2, %v3205_v12  ;;  %v3213_v12 = vld [vmem:[%s4808_s3 + $0x28] sm:$0xff]  }
  0x33   : > { %2943 = vmatprep.mubr.msk.bf16.mxu0 %vm400_vm2, %v3206_v13  ;;  %601 = vperm.xlu0 %3202, %v527_v19   ;;  %v3214_v13 = vld [vmem:[%s4808_s3 + $0x30] sm:$0xff]  }
  0x34   : > { %606 = vperm.xlu1 %3203, %v528_v20  }
  0x37   : > { %591 = vperm.xlu0 %3202, %v525_v21  }
  0x38   : > { %596 = vperm.xlu1 %3203, %v526_v22  }
  0x3a   : > { %2944 = vmatmul.mubr.msk.bf16.gmra.mxu0 %vm400_vm2, %v3207_v18 }
  0x3b   : > { %581 = vperm.xlu0 %3202, %v523_v23   ;;  %2987 = vmatprep.mubr.bf16.mxu0 %v3216_v15 }
  0x3c   : > { %586 = vperm.xlu1 %3203, %v524_v24  }
  0x3f   : > { %571 = vperm.xlu0 %3202, %v521_v25  }
  0x40   : > { %576 = vperm.xlu1 %3203, %v522_v26  }
  0x43   : > { %561 = vperm.xlu0 %3202, %v519_v27  }
  0x44   : > { %566 = vperm.xlu1 %3203, %v520_v28  }
  0x47   : > { %551 = vperm.xlu0 %3202, %v517_v29  }
  0x48   : > { %556 = vperm.xlu1 %3203, %v518_v30  }
  0x4b   : > { %541 = vperm.xlu0 %3202, %v515_v31  }
  0x4c   : > { %546 = vperm.xlu1 %3203, %v516_v32  }
  0x4f   : > { %531 = vperm.xlu0 %3202, %v513_v33  }
  0x50   : > { %536 = vperm.xlu1 %3203, %v514_v34  }
  0x9e   : > { %v373_v38 = vpop.permute.xlu0 %372 }
  0x9f   : > { %v363_v36 = vpop.permute.xlu1 %362 }
  0xa2   : > { %v378_v43 = vpop.permute.xlu0 %377 }
  0xa3   : > { %v368_v41 = vpop.permute.xlu1 %367 }
  0xa6   : > { %v353_v51 = vpop.permute.xlu0 %352 }
  0xa7   : > { %v358_v47 = vpop.permute.xlu1 %357 }
  0xaa   : > { %v343_v1 = vpop.permute.xlu0 %342 }
  0xab   : > { %v348_v61 = vpop.permute.xlu1 %347 }
  0xae   : > { %v602_v23 = vpop.permute.xlu0 %601 }
  0xaf   : > { %v607_v21 = vpop.permute.xlu1 %606 }
  0xb2   : > { %v592_v28 = vpop.permute.xlu0 %591 }
  0xb3   : > { %v597_v26 = vpop.permute.xlu1 %596 }
  0xb6   : > { %v582_v33 = vpop.permute.xlu0 %581 }
  0xb7   : > { %v587_v31 = vpop.permute.xlu1 %586 }
  0xf2   : > { %v2941_v37 = vpop.f32.mrf.mxu0 }
  0xf3   : > { %v463_v57 = vadd.f32 %v2941_v37, %v353_v51 }
  0xf4   : > { %v454_v39 = vpop.f32.mrf.mxu0 }
  0xf5   : > { %v487_v2 = vmax.f32 %v463_v57, 0.0  ;;  %v455_v3 = vadd.f32 %v454_v39, %v343_v1  ;;  %v572_v39 = vpop.permute.xlu0 %571 }
  0xf6   : > { %v2942_v40 = vpop.f32.mrf.mxu0 }
  0xf7   : > { %v466_v53 = vadd.f32 %v2942_v40, %v358_v47  ;;  %v485_v6 = vmax.f32 %v455_v3, 0.0 }
  0xf8   : > { %v457_v42 = vpop.f32.mrf.mxu0 }
  0xf9   : > { %v488_v62 = vmax.f32 %v466_v53, 0.0  ;;  %v458_v63 = vadd.f32 %v457_v42, %v348_v61  ;;  %v562_v53 = vpop.permute.xlu0 %561 }
  0xfa   : > { %v2945_v44 = vpop.f32.mrf.mxu0 }
  0xfb   : > { %v479_v46 = vadd.f32 %v2945_v44, %v373_v38  ;;  %v510_v4 = vpack.c.bf16 %v488_v62, %v487_v2  ;;  %v486_v5 = vmax.f32 %v458_v63, 0.0 }
  0xfc   : > { %v470_v45 = vpop.f32.mrf.mxu0 }
  0xfd   : > { %v471_v49 = vadd.f32 %v470_v45, %v363_v36  ;;  %v491_v54 = vmax.f32 %v479_v46, 0.0  ;;  %v509_v7 = vpack.c.bf16 %v486_v5, %v485_v6  ;;  %v577_v36 = vpop.permute.xlu1 %576  ;;  %v552_v63 = vpop.permute.xlu0 %551 }
  0xfe   : > { %v2946_v48 = vpop.f32.mrf.mxu0 }
  0xff   : > { %v482_v50 = vadd.f32 %v2946_v48, %v378_v43  ;;  %v489_v58 = vmax.f32 %v471_v49, 0.0 }
 0x100   : > { %v473_v52 = vpop.f32.mrf.mxu0 }
 0x101   : > { %v492_v55 = vmax.f32 %v482_v50, 0.0  ;;  %v474_v56 = vadd.f32 %v473_v52, %v368_v41  ;;  %v567_v48 = vpop.permute.xlu1 %566 }
 0x103   : > { %v490_v59 = vmax.f32 %v474_v56, 0.0  ;;  %v512_v60 = vpack.c.bf16 %v492_v55, %v491_v54 }
 0x105   : > { %v511_v0 = vpack.c.bf16 %v490_v59, %v489_v58  ;;  %2947 = vmatprep.subr.bf16.mxu1 %v512_v60  ;;  %v557_v59 = vpop.permute.xlu1 %556 }
 0x106   : > { %2948 = vmatpush3.bf16.msra.mxu1 %v512_v60 }
 0x107   : > { %2949 = vmatprep.subr.bf16.mxu1 %v511_v0 }
 0x109   : > { %v547_v5 = vpop.permute.xlu1 %546 }
 0x10a   : > { %2950 = vmatpush3.bf16.msra.mxu1 %v511_v0 }
 0x10b   : > { %2951 = vmatprep.subr.bf16.mxu1 %v510_v4 }
 0x10e   : > { %2952 = vmatpush3.bf16.msra.mxu1 %v510_v4 }
 0x10f   : > { %2953 = vmatprep.subr.bf16.mxu1 %v509_v7 }
 0x112   : > { %2954 = vmatpush3.bf16.msra.mxu1 %v509_v7 }
 0x115   : > { %2956 = vmatmul.mubr.msk.bf16.vlgmr.msra.gmra.mxu1 %vm649_vm3, %v3209_v8  ;;  %v542_v8 = vpop.permute.xlu0 %541 }
 0x116   : > { %2959 = vmatprep.mubr.msk.bf16.mxu1 %vm649_vm3, %v3210_v9 }
 0x11d   : > { %2960 = vmatmul.mubr.msk.bf16.gmra.mxu1 %vm649_vm3, %v3211_v10 }
 0x11e   : > { %2963 = vmatprep.mubr.msk.bf16.mxu1 %vm649_vm3, %v3212_v11 }
 0x125   : > { %2964 = vmatmul.mubr.msk.bf16.gmra.mxu1 %vm649_vm3, %v3213_v12 }
 0x126   : > { %2967 = vmatprep.mubr.msk.bf16.mxu1 %vm649_vm3, %v3214_v13 }
 0x12d   : > { %2968 = vmatmul.mubr.msk.bf16.gmra.mxu1 %vm649_vm3, %v3215_v14  ;;  %v537_v14 = vpop.permute.xlu1 %536 }
 0x12e   : > { %3055 = vmatprep.mubr.bf16.mxu1 %v3217_v16 }
 0x1d5   : > { %v3618_v17 = vpop.f32.mrf.mxu1 }
 0x1d6   : > { %v717_v12 = vadd.f32 %v3618_v17, %v542_v8  ;;  %v3266_v8 = vld [vmem:[#allocation2 + $0x1d0] sm:$0xff]  }
 0x1d7   : > { %v3620_v18 = vpop.f32.mrf.mxu1 }
 0x1d9   : > { %v3622_v19 = vpop.f32.mrf.mxu1 }
 0x1da   : > { %v720_v9 = vadd.f32 %v3622_v19, %v547_v5  ;;  %v3261_v5 = vld [vmem:[#allocation2 + $0xb8] sm:$0xff]  }
 0x1db   : > { %v3624_v20 = vpop.f32.mrf.mxu1 }
 0x1dc   : > { %v774_v15 = vmax.f32 %v720_v9, 0.0  ;;  %v712_v16 = vadd.f32 %v3624_v20, %v537_v14  ;;  %v3218_v20 = vld [vmem:[#allocation2 + $0x8] sm:$0xff]  }
 0x1dd   : > { %v2961_v22 = vpop.f32.mrf.mxu1  ;;  %v3265_v9 = vld [vmem:[#allocation2 + $0xc8] sm:$0xff]  }
 0x1de   : > { %v733_v0 = vadd.f32 %v2961_v22, %v562_v53  ;;  %v532_v22 = vpop.permute.xlu0 %531  ;;  %v3245_v53 = vld [vmem:[#allocation2 + $0x78] sm:$0xff]   ;;  %v3271_v14 = vld [vmem:[#allocation2 + $0x1e8] sm:$0xff]  }
 0x1df   : > { %v724_v24 = vpop.f32.mrf.mxu1  ;;  %v709_v19 = vadd.f32 %v3620_v18, %v532_v22  ;;  %v3222_v18 = vld [vmem:[#allocation2 + $0x120] sm:$0xff]   ;;  %v3275_v22 = vld [vmem:[#allocation2 + $0x1f8] sm:$0xff]  }
 0x1e0   : > { %v777_v6 = vmax.f32 %v733_v0, 0.0  ;;  %v725_v7 = vadd.f32 %v724_v24, %v552_v63  ;;  %v3256_v63 = vld [vmem:[#allocation2 + $0xa0] sm:$0xff]   ;;  %v3258_v0 = vld [vmem:[#allocation2 + $0x1b0] sm:$0xff]  }
 0x1e1   : > { %v2962_v25 = vpop.f32.mrf.mxu1  ;;  %v771_v17 = vmax.f32 %v709_v19, 0.0  ;;  %v3277_v19 = vld [vmem:[#allocation2 + $0xf8] sm:$0xff]  }
 0x1e2   : > { %v736_v60 = vadd.f32 %v2962_v25, %v567_v48  ;;  %v775_v13 = vmax.f32 %v725_v7, 0.0  ;;  %v772_v25 = vmax.f32 %v712_v16, 0.0  ;;  %v3242_v48 = vld [vmem:[#allocation2 + $0x170] sm:$0xff]   ;;  %v3264_v7 = vld [vmem:[#allocation2 + $0xc0] sm:$0xff]  }
 0x1e3   : > { %v727_v27 = vpop.f32.mrf.mxu1  ;;  %v3274_v16 = vld [vmem:[#allocation2 + $0x1f0] sm:$0xff]  }
 0x1e4   : > { %v778_v2 = vmax.f32 %v736_v60, 0.0  ;;  %v728_v3 = vadd.f32 %v727_v27, %v557_v59  ;;  %v3219_v27 = vld [vmem:[#allocation2 + $0x118] sm:$0xff]   ;;  %v3252_v59 = vld [vmem:[#allocation2 + $0x90] sm:$0xff]   ;;  %v3254_v60 = vld [vmem:[#allocation2 + $0x1a0] sm:$0xff]  }
 0x1e5   : > { %v2965_v29 = vpop.f32.mrf.mxu1 }
 0x1e6   : > { %v749_v49 = vadd.f32 %v2965_v29, %v582_v33  ;;  %v918_v10 = vpack.c.bf16 %v778_v2, %v777_v6  ;;  %v776_v11 = vmax.f32 %v728_v3, 0.0  ;;  %v3221_v29 = vld [vmem:[#allocation2 + $0x18] sm:$0xff]   ;;  %v3225_v33 = vld [vmem:[#allocation2 + $0x28] sm:$0xff]   ;;  %v3260_v3 = vld [vmem:[#allocation2 + $0xb0] sm:$0xff]  }
 0x1e7   : > { %v740_v30 = vpop.f32.mrf.mxu1  ;;  %v3259_v2 = vld [vmem:[#allocation2 + $0x1b8] sm:$0xff]   ;;  %v3263_v6 = vld [vmem:[#allocation2 + $0x1c8] sm:$0xff]  }
 0x1e8   : > { %v781_v57 = vmax.f32 %v749_v49, 0.0  ;;  %v741_v58 = vadd.f32 %v740_v30, %v572_v39  ;;  %v3223_v30 = vld [vmem:[#allocation2 + $0x128] sm:$0xff]   ;;  %v3232_v39 = vld [vmem:[#allocation2 + $0x40] sm:$0xff]  }
 0x1e9   : > { %v2966_v32 = vpop.f32.mrf.mxu1  ;;  %v3241_v49 = vld [vmem:[#allocation2 + $0x68] sm:$0xff]  }
 0x1ea   : > { %v752_v44 = vadd.f32 %v2966_v32, %v587_v31  ;;  %v779_v1 = vmax.f32 %v741_v58, 0.0  ;;  %v3224_v31 = vld [vmem:[#allocation2 + $0x20] sm:$0xff]   ;;  %v3226_v32 = vld [vmem:[#allocation2 + $0x130] sm:$0xff]   ;;  %v3251_v58 = vld [vmem:[#allocation2 + $0x198] sm:$0xff]  }
 0x1eb   : > { %v743_v34 = vpop.f32.mrf.mxu1 }
 0x1ec   : > { %v782_v54 = vmax.f32 %v752_v44, 0.0  ;;  %v744_v55 = vadd.f32 %v743_v34, %v577_v36  ;;  %v3227_v34 = vld [vmem:[#allocation2 + $0x138] sm:$0xff]   ;;  %v3230_v36 = vld [vmem:[#allocation2 + $0x140] sm:$0xff]  }
 0x1ed   : > { %v2969_v35 = vpop.f32.mrf.mxu1  ;;  %v3238_v44 = vld [vmem:[#allocation2 + $0x160] sm:$0xff]  }
 0x1ee   : > { %v765_v38 = vadd.f32 %v2969_v35, %v602_v23  ;;  %v920_v61 = vpack.c.bf16 %v782_v54, %v781_v57  ;;  %v780_v62 = vmax.f32 %v744_v55, 0.0  ;;  %v773_v23 = vmax.f32 %v717_v12, 0.0  ;;  %v3228_v35 = vld [vmem:[#allocation2 + $0x30] sm:$0xff]   ;;  %v3247_v54 = vld [vmem:[#allocation2 + $0x188] sm:$0xff]   ;;  %v3248_v55 = vld [vmem:[#allocation2 + $0x80] sm:$0xff]  }
 0x1ef   : > { %v756_v37 = vpop.f32.mrf.mxu1  ;;  %v3249_v57 = vld [vmem:[#allocation2 + $0x88] sm:$0xff]   ;;  %v3270_v12 = vld [vmem:[#allocation2 + $0x1e0] sm:$0xff]  }
 0x1f0   : > { %v757_v41 = vadd.f32 %v756_v37, %v592_v28  ;;  %v785_v45 = vmax.f32 %v765_v38, 0.0  ;;  %v919_v4 = vpack.c.bf16 %v780_v62, %v779_v1  ;;  %v916_v24 = vpack.c.bf16 %v774_v15, %v773_v23  ;;  %v3220_v28 = vld [vmem:[#allocation2 + $0x10] sm:$0xff]   ;;  %v3229_v37 = vld [vmem:[#allocation2 + $0x38] sm:$0xff]   ;;  %v3231_v38 = vld [vmem:[#allocation2 + $0x148] sm:$0xff]  }
 0x1f1   : > { %v2970_v40 = vpop.f32.mrf.mxu1  ;;  %v3255_v62 = vld [vmem:[#allocation2 + $0x1a8] sm:$0xff]   ;;  %v3272_v15 = vld [vmem:[#allocation2 + $0xe0] sm:$0xff]   ;;  %v3276_v23 = vld [vmem:[#allocation2 + $0xf0] sm:$0xff]  }
 0x1f2   : > { %v768_v42 = vadd.f32 %v2970_v40, %v607_v21  ;;  %v783_v50 = vmax.f32 %v757_v41, 0.0  ;;  %v917_v21 = vpack.c.bf16 %v776_v11, %v775_v13  ;;  %v3234_v40 = vld [vmem:[#allocation2 + $0x150] sm:$0xff]   ;;  %v3233_v41 = vld [vmem:[#allocation2 + $0x48] sm:$0xff]   ;;  %v3269_v13 = vld [vmem:[#allocation2 + $0xd8] sm:$0xff]  }
 0x1f3   : > { %v759_v43 = vpop.f32.mrf.mxu1  ;;  %v3257_v1 = vld [vmem:[#allocation2 + $0xa8] sm:$0xff]   ;;  %v3268_v11 = vld [vmem:[#allocation2 + $0xd0] sm:$0xff]  }
 0x1f4   : > { %v786_v46 = vmax.f32 %v768_v42, 0.0  ;;  %v760_v47 = vadd.f32 %v759_v43, %v597_v26  ;;  %v915_v26 = vpack.c.bf16 %v772_v25, %v771_v17  ;;  %v3235_v42 = vld [vmem:[#allocation2 + $0x158] sm:$0xff]   ;;  %v3236_v43 = vld [vmem:[#allocation2 + $0x50] sm:$0xff]   ;;  %v3279_v25 = vld [vmem:[#allocation2 + $0x108] sm:$0xff]  }
 0x1f6   : > { %v922_v51 = vpack.c.bf16 %v786_v46, %v785_v45  ;;  %v784_v52 = vmax.f32 %v760_v47, 0.0  ;;  %v3237_v45 = vld [vmem:[#allocation2 + $0x58] sm:$0xff]   ;;  %v3239_v46 = vld [vmem:[#allocation2 + $0x168] sm:$0xff]   ;;  %v3240_v47 = vld [vmem:[#allocation2 + $0x60] sm:$0xff]  }
 0x1f8   : > { %v921_v56 = vpack.c.bf16 %v784_v52, %v783_v50  ;;  %2971 = vmatprep.subr.bf16.mxu0 %v922_v51  ;;  %3115 = vmatprep.subr.bf16.mxu1 %v922_v51  ;;  %v3243_v50 = vld [vmem:[#allocation2 + $0x178] sm:$0xff]   ;;  %v3246_v52 = vld [vmem:[#allocation2 + $0x180] sm:$0xff]  }
 0x1f9   : > { %2972 = vmatpush3.bf16.msra.mxu0 %v922_v51  ;;  %3123 = vmatpush3.bf16.msra.mxu1 %v922_v51  ;;  %v3244_v51 = vld [vmem:[#allocation2 + $0x70] sm:$0xff]  }
 0x1fa   : > { %2973 = vmatprep.subr.bf16.mxu0 %v921_v56  ;;  %3116 = vmatprep.subr.bf16.mxu1 %v921_v56 }
 0x1fd   : > { %2974 = vmatpush3.bf16.msra.mxu0 %v921_v56  ;;  %3124 = vmatpush3.bf16.msra.mxu1 %v921_v56  ;;  %v3250_v56 = vld [vmem:[#allocation2 + $0x190] sm:$0xff]  }
 0x1fe   : > { %2975 = vmatprep.subr.bf16.mxu0 %v920_v61  ;;  %3117 = vmatprep.subr.bf16.mxu1 %v920_v61 }
 0x201   : > { %2976 = vmatpush3.bf16.msra.mxu0 %v920_v61  ;;  %3125 = vmatpush3.bf16.msra.mxu1 %v920_v61  ;;  %v3253_v61 = vld [vmem:[#allocation2 + $0x98] sm:$0xff]  }
 0x202   : > { %2977 = vmatprep.subr.bf16.mxu0 %v919_v4  ;;  %3118 = vmatprep.subr.bf16.mxu1 %v919_v4 }
 0x205   : > { %2978 = vmatpush3.bf16.msra.mxu0 %v919_v4  ;;  %3126 = vmatpush3.bf16.msra.mxu1 %v919_v4  ;;  %v3262_v4 = vld [vmem:[#allocation2 + $0x1c0] sm:$0xff]  }
 0x206   : > { %2979 = vmatprep.subr.bf16.mxu0 %v918_v10  ;;  %3119 = vmatprep.subr.bf16.mxu1 %v918_v10 }
 0x209   : > { %2980 = vmatpush3.bf16.msra.mxu0 %v918_v10  ;;  %3127 = vmatpush3.bf16.msra.mxu1 %v918_v10  ;;  %v3267_v10 = vld [vmem:[#allocation2 + $0x1d8] sm:$0xff]  }
 0x20a   : > { %2981 = vmatprep.subr.bf16.mxu0 %v917_v21  ;;  %3120 = vmatprep.subr.bf16.mxu1 %v917_v21 }
 0x20d   : > { %2982 = vmatpush3.bf16.msra.mxu0 %v917_v21  ;;  %3128 = vmatpush3.bf16.msra.mxu1 %v917_v21  ;;  %v3273_v21 = vld [vmem:[#allocation2 + $0xe8] sm:$0xff]  }
 0x20e   : > { %2983 = vmatprep.subr.bf16.mxu0 %v916_v24  ;;  %3121 = vmatprep.subr.bf16.mxu1 %v916_v24 }
 0x211   : > { %2984 = vmatpush3.bf16.msra.mxu0 %v916_v24  ;;  %3129 = vmatpush3.bf16.msra.mxu1 %v916_v24  ;;  %v3278_v24 = vld [vmem:[#allocation2 + $0x100] sm:$0xff]  }
 0x212   : > { %2985 = vmatprep.subr.bf16.mxu0 %v915_v26  ;;  %3122 = vmatprep.subr.bf16.mxu1 %v915_v26 }
 0x215   : > { %2986 = vmatpush3.bf16.msra.mxu0 %v915_v26  ;;  %3130 = vmatpush3.bf16.msra.mxu1 %v915_v26 }
 0x218   : > { %2988 = vmatmul.mubr.bf16.vlgmr.msra.gmra.mxu0 %v3218_v20  ;;  %3056 = vmatmul.mubr.bf16.vlgmr.msra.gmra.mxu1 %v3219_v27 }
 0x219   : > { %2991 = vmatprep.mubr.bf16.mxu0 %v3220_v28  ;;  %3059 = vmatprep.mubr.bf16.mxu1 %v3222_v18 }
 0x220   : > { %2992 = vmatmul.mubr.bf16.gmra.mxu0 %v3221_v29  ;;  %3060 = vmatmul.mubr.bf16.gmra.mxu1 %v3223_v30 }
 0x221   : > { %2995 = vmatprep.mubr.bf16.mxu0 %v3224_v31  ;;  %3063 = vmatprep.mubr.bf16.mxu1 %v3226_v32 }
 0x228   : > { %2996 = vmatmul.mubr.bf16.gmra.mxu0 %v3225_v33  ;;  %3064 = vmatmul.mubr.bf16.gmra.mxu1 %v3227_v34 }
 0x229   : > { %2999 = vmatprep.mubr.bf16.mxu0 %v3228_v35  ;;  %3067 = vmatprep.mubr.bf16.mxu1 %v3230_v36 }
 0x230   : > { %3000 = vmatmul.mubr.bf16.gmra.mxu0 %v3229_v37  ;;  %3068 = vmatmul.mubr.bf16.gmra.mxu1 %v3231_v38 }
 0x231   : > { %3003 = vmatprep.mubr.bf16.mxu0 %v3232_v39  ;;  %3071 = vmatprep.mubr.bf16.mxu1 %v3234_v40 }
 0x238   : > { %3004 = vmatmul.mubr.bf16.gmra.mxu0 %v3233_v41  ;;  %3072 = vmatmul.mubr.bf16.gmra.mxu1 %v3235_v42 }
 0x239   : > { %3007 = vmatprep.mubr.bf16.mxu0 %v3236_v43  ;;  %3075 = vmatprep.mubr.bf16.mxu1 %v3238_v44 }
 0x240   : > { %3008 = vmatmul.mubr.bf16.gmra.mxu0 %v3237_v45  ;;  %3076 = vmatmul.mubr.bf16.gmra.mxu1 %v3239_v46 }
 0x241   : > { %3011 = vmatprep.mubr.bf16.mxu0 %v3240_v47  ;;  %3079 = vmatprep.mubr.bf16.mxu1 %v3242_v48 }
 0x248   : > { %3012 = vmatmul.mubr.bf16.gmra.mxu0 %v3241_v49  ;;  %3080 = vmatmul.mubr.bf16.gmra.mxu1 %v3243_v50 }
 0x249   : > { %3015 = vmatprep.mubr.bf16.mxu0 %v3244_v51  ;;  %3083 = vmatprep.mubr.bf16.mxu1 %v3246_v52 }
 0x250   : > { %3016 = vmatmul.mubr.bf16.gmra.mxu0 %v3245_v53  ;;  %3084 = vmatmul.mubr.bf16.gmra.mxu1 %v3247_v54 }
 0x251   : > { %3019 = vmatprep.mubr.bf16.mxu0 %v3248_v55  ;;  %3087 = vmatprep.mubr.bf16.mxu1 %v3250_v56 }
 0x258   : > { %3020 = vmatmul.mubr.bf16.gmra.mxu0 %v3249_v57  ;;  %3088 = vmatmul.mubr.bf16.gmra.mxu1 %v3251_v58 }
 0x259   : > { %3023 = vmatprep.mubr.bf16.mxu0 %v3252_v59  ;;  %3091 = vmatprep.mubr.bf16.mxu1 %v3254_v60 }
 0x260   : > { %3024 = vmatmul.mubr.bf16.gmra.mxu0 %v3253_v61  ;;  %3092 = vmatmul.mubr.bf16.gmra.mxu1 %v3255_v62 }
 0x261   : > { %3027 = vmatprep.mubr.bf16.mxu0 %v3256_v63  ;;  %3095 = vmatprep.mubr.bf16.mxu1 %v3258_v0 }
 0x268   : > { %3028 = vmatmul.mubr.bf16.gmra.mxu0 %v3257_v1  ;;  %3096 = vmatmul.mubr.bf16.gmra.mxu1 %v3259_v2 }
 0x269   : > { %3031 = vmatprep.mubr.bf16.mxu0 %v3260_v3  ;;  %3099 = vmatprep.mubr.bf16.mxu1 %v3262_v4 }
 0x270   : > { %3032 = vmatmul.mubr.bf16.gmra.mxu0 %v3261_v5  ;;  %3100 = vmatmul.mubr.bf16.gmra.mxu1 %v3263_v6 }
 0x271   : > { %3035 = vmatprep.mubr.bf16.mxu0 %v3264_v7  ;;  %3103 = vmatprep.mubr.bf16.mxu1 %v3266_v8 }
 0x278   : > { %3036 = vmatmul.mubr.bf16.gmra.mxu0 %v3265_v9  ;;  %3104 = vmatmul.mubr.bf16.gmra.mxu1 %v3267_v10 }
 0x279   : > { %3039 = vmatprep.mubr.bf16.mxu0 %v3268_v11  ;;  %3107 = vmatprep.mubr.bf16.mxu1 %v3270_v12 }
 0x280   : > { %3040 = vmatmul.mubr.bf16.gmra.mxu0 %v3269_v13  ;;  %3108 = vmatmul.mubr.bf16.gmra.mxu1 %v3271_v14 }
 0x281   : > { %3043 = vmatprep.mubr.bf16.mxu0 %v3272_v15  ;;  %3111 = vmatprep.mubr.bf16.mxu1 %v3274_v16 }
 0x288   : > { %3044 = vmatmul.mubr.bf16.gmra.mxu0 %v3273_v21  ;;  %3112 = vmatmul.mubr.bf16.gmra.mxu1 %v3275_v22 }
 0x289   : > { %3047 = vmatprep.mubr.bf16.mxu0 %v3276_v23 }
 0x290   : > { %3048 = vmatmul.mubr.bf16.gmra.mxu0 %v3277_v19 }
 0x291   : > { %3051 = vmatprep.mubr.bf16.mxu0 %v3278_v24 }
 0x298   : > { %3052 = vmatmul.mubr.bf16.gmra.mxu0 %v3279_v25 }
 0x2d8   : > { %v2989_v17 = vpop.f32.mrf.mxu0  ;;  %v3057_v26 = vpop.f32.mrf.mxu1 }
 0x2d9   : > { %1992 = vmax.xlane.f32.xlu1 %v3057_v26  ;;  %1856 = vmax.xlane.f32.xlu0 %v2989_v17 }
 0x2da   : > { %v1341_v20 = vpop.f32.mrf.mxu0  ;;  %v1613_v27 = vpop.f32.mrf.mxu1 }
 0x2dc   : > { %v2990_v28 = vpop.f32.mrf.mxu0  ;;  %v3058_v29 = vpop.f32.mrf.mxu1 }
 0x2dd   : > { %1988 = vmax.xlane.f32.xlu1 %v1613_v27  ;;  %1852 = vmax.xlane.f32.xlu0 %v1341_v20 }
 0x2de   : > { %v1344_v18 = vpop.f32.mrf.mxu0  ;;  %v1616_v31 = vpop.f32.mrf.mxu1 }
 0x2e0   : > { %v2993_v30 = vpop.f32.mrf.mxu0  ;;  %v3061_v33 = vpop.f32.mrf.mxu1 }
 0x2e1   : > { %1858 = vmax.xlane.f32.xlu0 %v2990_v28  ;;  %1854 = vmax.xlane.f32.xlu1 %v1344_v18 }
 0x2e2   : > { %v1357_v32 = vpop.f32.mrf.mxu0  ;;  %v1629_v35 = vpop.f32.mrf.mxu1 }
 0x2e4   : > { %v2994_v34 = vpop.f32.mrf.mxu0  ;;  %v3062_v36 = vpop.f32.mrf.mxu1 }
 0x2e5   : > { %1994 = vmax.xlane.f32.xlu0 %v3058_v29  ;;  %1864 = vmax.xlane.f32.xlu1 %v2993_v30 }
 0x2e6   : > { %v1360_v37 = vpop.f32.mrf.mxu0  ;;  %v1632_v39 = vpop.f32.mrf.mxu1 }
 0x2e8   : > { %v2997_v38 = vpop.f32.mrf.mxu0  ;;  %v3065_v41 = vpop.f32.mrf.mxu1 }
 0x2e9   : > { %1990 = vmax.xlane.f32.xlu0 %v1616_v31  ;;  %2000 = vmax.xlane.f32.xlu1 %v3061_v33 }
 0x2ea   : > { %v1373_v40 = vpop.f32.mrf.mxu0  ;;  %v1645_v43 = vpop.f32.mrf.mxu1 }
 0x2ec   : > { %v2998_v42 = vpop.f32.mrf.mxu0  ;;  %v3066_v44 = vpop.f32.mrf.mxu1 }
 0x2ed   : > { %1860 = vmax.xlane.f32.xlu1 %v1357_v32  ;;  %1866 = vmax.xlane.f32.xlu0 %v2994_v34 }
 0x2ee   : > { %v1376_v45 = vpop.f32.mrf.mxu0  ;;  %v1648_v47 = vpop.f32.mrf.mxu1 }
 0x2f0   : > { %v3001_v46 = vpop.f32.mrf.mxu0  ;;  %v3069_v49 = vpop.f32.mrf.mxu1 }
 0x2f1   : > { %1996 = vmax.xlane.f32.xlu1 %v1629_v35  ;;  %2002 = vmax.xlane.f32.xlu0 %v3062_v36 }
 0x2f2   : > { %v1389_v48 = vpop.f32.mrf.mxu0  ;;  %v1661_v51 = vpop.f32.mrf.mxu1 }
 0x2f4   : > { %v3002_v50 = vpop.f32.mrf.mxu0  ;;  %v3070_v52 = vpop.f32.mrf.mxu1 }
 0x2f5   : > { %1862 = vmax.xlane.f32.xlu0 %v1360_v37  ;;  %1872 = vmax.xlane.f32.xlu1 %v2997_v38 }
 0x2f6   : > { %v1392_v53 = vpop.f32.mrf.mxu0  ;;  %v1664_v55 = vpop.f32.mrf.mxu1 }
 0x2f8   : > { %v3005_v54 = vpop.f32.mrf.mxu0  ;;  %v3073_v57 = vpop.f32.mrf.mxu1 }
 0x2f9   : > { %1998 = vmax.xlane.f32.xlu0 %v1632_v39  ;;  %2008 = vmax.xlane.f32.xlu1 %v3065_v41 }
 0x2fa   : > { %v1405_v56 = vpop.f32.mrf.mxu0  ;;  %v1677_v59 = vpop.f32.mrf.mxu1 }
 0x2fc   : > { %v3006_v58 = vpop.f32.mrf.mxu0  ;;  %v3074_v60 = vpop.f32.mrf.mxu1 }
 0x2fd   : > { %1868 = vmax.xlane.f32.xlu1 %v1373_v40  ;;  %1874 = vmax.xlane.f32.xlu0 %v2998_v42 }
 0x2fe   : > { %v1408_v61 = vpop.f32.mrf.mxu0  ;;  %v1680_v63 = vpop.f32.mrf.mxu1 }
 0x300   : > { %v3009_v62 = vpop.f32.mrf.mxu0  ;;  %v3077_v1 = vpop.f32.mrf.mxu1 }
 0x301   : > { %2004 = vmax.xlane.f32.xlu1 %v1645_v43  ;;  %2010 = vmax.xlane.f32.xlu0 %v3066_v44 }
 0x302   : > { %v1421_v0 = vpop.f32.mrf.mxu0  ;;  %v1693_v3 = vpop.f32.mrf.mxu1 }
 0x304   : > { %v3010_v2 = vpop.f32.mrf.mxu0  ;;  %v3078_v4 = vpop.f32.mrf.mxu1 }
 0x305   : > { %1870 = vmax.xlane.f32.xlu0 %v1376_v45  ;;  %1880 = vmax.xlane.f32.xlu1 %v3001_v46 }
 0x306   : > { %v1424_v5 = vpop.f32.mrf.mxu0  ;;  %v1696_v7 = vpop.f32.mrf.mxu1 }
 0x308   : > { %v3013_v6 = vpop.f32.mrf.mxu0  ;;  %v3081_v9 = vpop.f32.mrf.mxu1 }
 0x309   : > { %2006 = vmax.xlane.f32.xlu0 %v1648_v47  ;;  %2016 = vmax.xlane.f32.xlu1 %v3069_v49 }
 0x30a   : > { %v1437_v8 = vpop.f32.mrf.mxu0  ;;  %v1709_v11 = vpop.f32.mrf.mxu1 }
 0x30c   : > { %v3014_v10 = vpop.f32.mrf.mxu0  ;;  %v3082_v12 = vpop.f32.mrf.mxu1 }
 0x30d   : > { %1876 = vmax.xlane.f32.xlu1 %v1389_v48  ;;  %1882 = vmax.xlane.f32.xlu0 %v3002_v50 }
 0x30e   : > { %v1440_v13 = vpop.f32.mrf.mxu0  ;;  %v1712_v15 = vpop.f32.mrf.mxu1 }
 0x310   : > { %v3017_v14 = vpop.f32.mrf.mxu0  ;;  %v3085_v21 = vpop.f32.mrf.mxu1 }
 0x311   : > { %2012 = vmax.xlane.f32.xlu1 %v1661_v51  ;;  %2018 = vmax.xlane.f32.xlu0 %v3070_v52 }
 0x312   : > { %v1453_v16 = vpop.f32.mrf.mxu0  ;;  %v1725_v23 = vpop.f32.mrf.mxu1 }
 0x314   : > { %v3018_v22 = vpop.f32.mrf.mxu0  ;;  %v3086_v19 = vpop.f32.mrf.mxu1 }
 0x315   : > { %1878 = vmax.xlane.f32.xlu0 %v1392_v53  ;;  %1888 = vmax.xlane.f32.xlu1 %v3005_v54 }
 0x316   : > { %v1456_v24 = vpop.f32.mrf.mxu0  ;;  %v1728_v17 = vpop.f32.mrf.mxu1 }
 0x318   : > { %v3021_v25 = vpop.f32.mrf.mxu0  ;;  %v3089_v20 = vpop.f32.mrf.mxu1 }
 0x319   : > { %2014 = vmax.xlane.f32.xlu0 %v1664_v55  ;;  %2024 = vmax.xlane.f32.xlu1 %v3073_v57 }
 0x31a   : > { %v1469_v26 = vpop.f32.mrf.mxu0  ;;  %v1741_v28 = vpop.f32.mrf.mxu1 }
 0x31c   : > { %v3022_v27 = vpop.f32.mrf.mxu0  ;;  %v3090_v18 = vpop.f32.mrf.mxu1 }
 0x31d   : > { %1884 = vmax.xlane.f32.xlu1 %v1405_v56  ;;  %1890 = vmax.xlane.f32.xlu0 %v3006_v58 }
 0x31e   : > { %v1472_v29 = vpop.f32.mrf.mxu0  ;;  %v1744_v33 = vpop.f32.mrf.mxu1 }
 0x320   : > { %v3025_v32 = vpop.f32.mrf.mxu0  ;;  %v3093_v37 = vpop.f32.mrf.mxu1 }
 0x321   : > { %2020 = vmax.xlane.f32.xlu1 %v1677_v59  ;;  %2026 = vmax.xlane.f32.xlu0 %v3074_v60 }
 0x322   : > { %v1485_v36 = vpop.f32.mrf.mxu0  ;;  %v1757_v41 = vpop.f32.mrf.mxu1 }
 0x324   : > { %v3026_v40 = vpop.f32.mrf.mxu0  ;;  %v3094_v45 = vpop.f32.mrf.mxu1 }
 0x325   : > { %1886 = vmax.xlane.f32.xlu0 %v1408_v61  ;;  %1896 = vmax.xlane.f32.xlu1 %v3009_v62 }
 0x326   : > { %v1488_v44 = vpop.f32.mrf.mxu0  ;;  %v1760_v49 = vpop.f32.mrf.mxu1 }
 0x328   : > { %v3029_v46 = vpop.f32.mrf.mxu0  ;;  %v3097_v53 = vpop.f32.mrf.mxu1 }
 0x329   : > { %2022 = vmax.xlane.f32.xlu0 %v1680_v63  ;;  %2032 = vmax.xlane.f32.xlu1 %v3077_v1 }
 0x32a   : > { %v1501_v50 = vpop.f32.mrf.mxu0  ;;  %v1773_v57 = vpop.f32.mrf.mxu1 }
 0x32c   : > { %v3030_v54 = vpop.f32.mrf.mxu0  ;;  %v3098_v62 = vpop.f32.mrf.mxu1 }
 0x32d   : > { %1892 = vmax.xlane.f32.xlu1 %v1421_v0  ;;  %1898 = vmax.xlane.f32.xlu0 %v3010_v2 }
 0x32e   : > { %v1504_v58 = vpop.f32.mrf.mxu0  ;;  %v1776_v2 = vpop.f32.mrf.mxu1 }
 0x330   : > { %v3033_v61 = vpop.f32.mrf.mxu0 }
 0x331   : > { %2028 = vmax.xlane.f32.xlu1 %v1693_v3  ;;  %2034 = vmax.xlane.f32.xlu0 %v3078_v4 }
 0x332   : > { %v1517_v1 = vpop.f32.mrf.mxu0 }
 0x335   : > { %1894 = vmax.xlane.f32.xlu0 %v1424_v5  ;;  %1904 = vmax.xlane.f32.xlu1 %v3013_v6  ;;  %v3034_v5 = vpop.f32.mrf.mxu0  ;;  %v3101_v6 = vpop.f32.mrf.mxu1 }
 0x339   : > { %2030 = vmax.xlane.f32.xlu0 %v1696_v7  ;;  %2040 = vmax.xlane.f32.xlu1 %v3081_v9  ;;  %v1520_v9 = vpop.f32.mrf.mxu0 }
 0x33d   : > { %1900 = vmax.xlane.f32.xlu1 %v1437_v8  ;;  %1906 = vmax.xlane.f32.xlu0 %v3014_v10  ;;  %v1789_v10 = vpop.f32.mrf.mxu1 }
 0x341   : > { %2036 = vmax.xlane.f32.xlu1 %v1709_v11  ;;  %2042 = vmax.xlane.f32.xlu0 %v3082_v12  ;;  %v3037_v11 = vpop.f32.mrf.mxu0 }
 0x345   : > { %1902 = vmax.xlane.f32.xlu0 %v1440_v13  ;;  %1912 = vmax.xlane.f32.xlu1 %v3017_v14  ;;  %v3102_v14 = vpop.f32.mrf.mxu1 }
 0x349   : > { %2038 = vmax.xlane.f32.xlu0 %v1712_v15  ;;  %2048 = vmax.xlane.f32.xlu1 %v3085_v21  ;;  %v1533_v15 = vpop.f32.mrf.mxu0 }
 0x34d   : > { %1908 = vmax.xlane.f32.xlu1 %v1453_v16  ;;  %1914 = vmax.xlane.f32.xlu0 %v3018_v22  ;;  %v1792_v22 = vpop.f32.mrf.mxu1 }
 0x351   : > { %2044 = vmax.xlane.f32.xlu1 %v1725_v23  ;;  %2050 = vmax.xlane.f32.xlu0 %v3086_v19  ;;  %v3038_v23 = vpop.f32.mrf.mxu0 }
 0x355   : > { %1910 = vmax.xlane.f32.xlu0 %v1456_v24  ;;  %1920 = vmax.xlane.f32.xlu1 %v3021_v25  ;;  %v3105_v25 = vpop.f32.mrf.mxu1 }
 0x359   : > { %2046 = vmax.xlane.f32.xlu0 %v1728_v17  ;;  %2056 = vmax.xlane.f32.xlu1 %v3089_v20  ;;  %v1536_v17 = vpop.f32.mrf.mxu0 }
 0x35d   : > { %1916 = vmax.xlane.f32.xlu1 %v1469_v26  ;;  %1922 = vmax.xlane.f32.xlu0 %v3022_v27  ;;  %v3041_v27 = vpop.f32.mrf.mxu0 }
 0x361   : > { %2052 = vmax.xlane.f32.xlu1 %v1741_v28  ;;  %2058 = vmax.xlane.f32.xlu0 %v3090_v18  ;;  %v1805_v28 = vpop.f32.mrf.mxu1 }
 0x362   : > { %v3630_v30 = vpop.xlane.xlu1 %1992  ;;  %v3632_v31 = vpop.xlane.xlu0 %1856 }
 0x363   : > { %4827 = vst [vmem:[#allocation5_spill] sm:$0xff] %v3630_v30 }
 0x365   : > { %1918 = vmax.xlane.f32.xlu0 %v1472_v29  ;;  %1928 = vmax.xlane.f32.xlu1 %v3025_v32  ;;  %v1549_v32 = vpop.f32.mrf.mxu0 }
 0x366   : > { %v3634_v34 = vpop.xlane.xlu1 %1988  ;;  %v3636_v35 = vpop.xlane.xlu0 %1852 }
 0x367   : > { %4828 = vst [vmem:[#allocation6_spill] sm:$0xff] %v3634_v34 }
 0x369   : > { %2054 = vmax.xlane.f32.xlu0 %v1744_v33  ;;  %2064 = vmax.xlane.f32.xlu1 %v3093_v37  ;;  %v3106_v33 = vpop.f32.mrf.mxu1 }
 0x36a   : > { %v3638_v38 = vpop.xlane.xlu0 %1858  ;;  %v3640_v39 = vpop.xlane.xlu1 %1854 }
 0x36d   : > { %1924 = vmax.xlane.f32.xlu1 %v1485_v36  ;;  %1930 = vmax.xlane.f32.xlu0 %v3026_v40  ;;  %v3042_v40 = vpop.f32.mrf.mxu0 }
 0x36e   : > { %v3642_v42 = vpop.xlane.xlu0 %1994  ;;  %v3644_v43 = vpop.xlane.xlu1 %1864 }
 0x36f   : > { %4829 = vst [vmem:[#allocation7_spill] sm:$0xff] %v3642_v42 }
 0x371   : > { %2060 = vmax.xlane.f32.xlu1 %v1757_v41  ;;  %2066 = vmax.xlane.f32.xlu0 %v3094_v45  ;;  %v1808_v41 = vpop.f32.mrf.mxu1 }
 0x372   : > { %v3646_v47 = vpop.xlane.xlu0 %1990  ;;  %v3648_v48 = vpop.xlane.xlu1 %2000 }
 0x373   : > { %4830 = vst [vmem:[#allocation8_spill] sm:$0xff] %v3646_v47  ;;  %4831 = vst [vmem:[#allocation9_spill] sm:$0xff] %v3648_v48 }
 0x375   : > { %1926 = vmax.xlane.f32.xlu0 %v1488_v44  ;;  %1936 = vmax.xlane.f32.xlu1 %v3029_v46  ;;  %v1552_v46 = vpop.f32.mrf.mxu0 }
 0x376   : > { %v3650_v51 = vpop.xlane.xlu1 %1860  ;;  %v3652_v52 = vpop.xlane.xlu0 %1866 }
 0x379   : > { %2062 = vmax.xlane.f32.xlu0 %v1760_v49  ;;  %2072 = vmax.xlane.f32.xlu1 %v3097_v53  ;;  %v3109_v49 = vpop.f32.mrf.mxu1 }
 0x37a   : > { %v3654_v55 = vpop.xlane.xlu1 %1996  ;;  %v3656_v56 = vpop.xlane.xlu0 %2002 }
 0x37b   : > { %4832 = vst [vmem:[#allocation10_spill] sm:$0xff] %v3654_v55  ;;  %4833 = vst [vmem:[#allocation11_spill] sm:$0xff] %v3656_v56 }
 0x37d   : > { %1932 = vmax.xlane.f32.xlu1 %v1501_v50  ;;  %1938 = vmax.xlane.f32.xlu0 %v3030_v54  ;;  %v3045_v50 = vpop.f32.mrf.mxu0 }
 0x37e   : > { %v3658_v59 = vpop.xlane.xlu0 %1862  ;;  %v3660_v60 = vpop.xlane.xlu1 %1872 }
 0x381   : > { %2068 = vmax.xlane.f32.xlu1 %v1773_v57  ;;  %2074 = vmax.xlane.f32.xlu0 %v3098_v62  ;;  %v1821_v57 = vpop.f32.mrf.mxu1 }
 0x382   : > { %v3662_v63 = vpop.xlane.xlu0 %1998  ;;  %v3664_v0 = vpop.xlane.xlu1 %2008 }
 0x383   : > { %4834 = vst [vmem:[#allocation12_spill] sm:$0xff] %v3662_v63  ;;  %4835 = vst [vmem:[#allocation13_spill] sm:$0xff] %v3664_v0 }
 0x385   : > { %1934 = vmax.xlane.f32.xlu0 %v1504_v58  ;;  %1944 = vmax.xlane.f32.xlu1 %v3033_v61  ;;  %v1565_v58 = vpop.f32.mrf.mxu0 }
 0x386   : > { %v3666_v3 = vpop.xlane.xlu1 %1868  ;;  %v3668_v4 = vpop.xlane.xlu0 %1874 }
 0x389   : > { %2070 = vmax.xlane.f32.xlu0 %v1776_v2  ;;  %2080 = vmax.xlane.f32.xlu1 %v3101_v6  ;;  %v3046_v2 = vpop.f32.mrf.mxu0 }
 0x38a   : > { %v3670_v7 = vpop.xlane.xlu1 %2004  ;;  %v3672_v8 = vpop.xlane.xlu0 %2010 }
 0x38b   : > { %4836 = vst [vmem:[#allocation14_spill] sm:$0xff] %v3670_v7  ;;  %4837 = vst [vmem:[#allocation15_spill] sm:$0xff] %v3672_v8 }
 0x38d   : > { %1940 = vmax.xlane.f32.xlu1 %v1517_v1  ;;  %1946 = vmax.xlane.f32.xlu0 %v3034_v5  ;;  %v3110_v1 = vpop.f32.mrf.mxu1 }
 0x38e   : > { %v3674_v12 = vpop.xlane.xlu0 %1870  ;;  %v3676_v13 = vpop.xlane.xlu1 %1880 }
 0x391   : > { %2076 = vmax.xlane.f32.xlu1 %v1789_v10  ;;  %2082 = vmax.xlane.f32.xlu0 %v3102_v14  ;;  %v1568_v10 = vpop.f32.mrf.mxu0 }
 0x392   : > { %v3678_v16 = vpop.xlane.xlu0 %2006  ;;  %v3680_v21 = vpop.xlane.xlu1 %2016 }
 0x393   : > { %4838 = vst [vmem:[#allocation16_spill] sm:$0xff] %v3678_v16  ;;  %4839 = vst [vmem:[#allocation17_spill] sm:$0xff] %v3680_v21 }
 0x395   : > { %1942 = vmax.xlane.f32.xlu0 %v1520_v9  ;;  %1952 = vmax.xlane.f32.xlu1 %v3037_v11  ;;  %v1824_v9 = vpop.f32.mrf.mxu1 }
 0x396   : > { %v3682_v19 = vpop.xlane.xlu1 %1876  ;;  %v3684_v24 = vpop.xlane.xlu0 %1882 }
 0x399   : > { %2078 = vmax.xlane.f32.xlu0 %v1792_v22  ;;  %2088 = vmax.xlane.f32.xlu1 %v3105_v25  ;;  %v3049_v22 = vpop.f32.mrf.mxu0 }
 0x39a   : > { %v3686_v26 = vpop.xlane.xlu1 %2012  ;;  %v3688_v20 = vpop.xlane.xlu0 %2018 }
 0x39b   : > { %4840 = vst [vmem:[#allocation18_spill] sm:$0xff] %v3686_v26  ;;  %4841 = vst [vmem:[#allocation19_spill] sm:$0xff] %v3688_v20 }
 0x39d   : > { %1948 = vmax.xlane.f32.xlu1 %v1533_v15  ;;  %1954 = vmax.xlane.f32.xlu0 %v3038_v23  ;;  %v3113_v15 = vpop.f32.mrf.mxu1 }
 0x39e   : > { %v3690_v18 = vpop.xlane.xlu0 %1878  ;;  %v3692_v29 = vpop.xlane.xlu1 %1888 }
 0x3a1   : > { %2084 = vmax.xlane.f32.xlu1 %v1805_v28  ;;  %2090 = vmax.xlane.f32.xlu0 %v3106_v33 }
 0x3a2   : > { %v3694_v36 = vpop.xlane.xlu0 %2014  ;;  %v3696_v37 = vpop.xlane.xlu1 %2024 }
 0x3a3   : > { %4842 = vst [vmem:[#allocation20_spill] sm:$0xff] %v3694_v36  ;;  %4843 = vst [vmem:[#allocation21_spill] sm:$0xff] %v3696_v37 }
 0x3a5   : > { %1950 = vmax.xlane.f32.xlu0 %v1536_v17  ;;  %1960 = vmax.xlane.f32.xlu1 %v3041_v27  ;;  %v1837_v17 = vpop.f32.mrf.mxu1  ;;  %v1581_v27 = vpop.f32.mrf.mxu0 }
 0x3a6   : > { %v3698_v44 = vpop.xlane.xlu1 %1884  ;;  %v3700_v45 = vpop.xlane.xlu0 %1890 }
 0x3a7   : > { %v3114_v33 = vpop.f32.mrf.mxu1 }
 0x3a9   : > { %2086 = vmax.xlane.f32.xlu0 %v1808_v41  ;;  %2096 = vmax.xlane.f32.xlu1 %v3109_v49  ;;  %v1840_v49 = vpop.f32.mrf.mxu1 }
 0x3aa   : > { %v3702_v53 = vpop.xlane.xlu1 %2020  ;;  %v3704_v54 = vpop.xlane.xlu0 %2026 }
 0x3ab   : > { %4844 = vst [vmem:[#allocation22_spill] sm:$0xff] %v3702_v53  ;;  %4845 = vst [vmem:[#allocation23_spill] sm:$0xff] %v3704_v54 }
 0x3ad   : > { %1956 = vmax.xlane.f32.xlu1 %v1549_v32  ;;  %1962 = vmax.xlane.f32.xlu0 %v3042_v40  ;;  %v3050_v40 = vpop.f32.mrf.mxu0 }
 0x3ae   : > { %v3706_v61 = vpop.xlane.xlu0 %1886  ;;  %v3708_v62 = vpop.xlane.xlu1 %1896 }
 0x3b1   : > { %2092 = vmax.xlane.f32.xlu1 %v1821_v57  ;;  %2098 = vmax.xlane.f32.xlu0 %v3110_v1 }
 0x3b2   : > { %v3710_v5 = vpop.xlane.xlu0 %2022  ;;  %v3712_v6 = vpop.xlane.xlu1 %2032 }
 0x3b3   : > { %4846 = vst [vmem:[#allocation24_spill] sm:$0xff] %v3710_v5  ;;  %4847 = vst [vmem:[#allocation25_spill] sm:$0xff] %v3712_v6 }
 0x3b5   : > { %1958 = vmax.xlane.f32.xlu0 %v1552_v46  ;;  %1968 = vmax.xlane.f32.xlu1 %v3045_v50  ;;  %v1584_v50 = vpop.f32.mrf.mxu0 }
 0x3b6   : > { %v3714_v11 = vpop.xlane.xlu1 %1892  ;;  %v3716_v14 = vpop.xlane.xlu0 %1898 }
 0x3b7   : > { %v3053_v1 = vpop.f32.mrf.mxu0 }
 0x3b9   : > { %2094 = vmax.xlane.f32.xlu0 %v1824_v9  ;;  %1964 = vmax.xlane.f32.xlu1 %v1565_v58 }
 0x3ba   : > { %v3718_v23 = vpop.xlane.xlu1 %2028  ;;  %v3720_v25 = vpop.xlane.xlu0 %2034 }
 0x3bb   : > { %4848 = vst [vmem:[#allocation26_spill] sm:$0xff] %v3718_v23  ;;  %4849 = vst [vmem:[#allocation27_spill] sm:$0xff] %v3720_v25 }
 0x3bd   : > { %2100 = vmax.xlane.f32.xlu1 %v1837_v17  ;;  %1970 = vmax.xlane.f32.xlu0 %v3046_v2 }
 0x3be   : > { %v3722_v28 = vpop.xlane.xlu0 %1894  ;;  %v3724_v32 = vpop.xlane.xlu1 %1904 }
 0x3c1   : > { %1966 = vmax.xlane.f32.xlu0 %v1568_v10  ;;  %1976 = vmax.xlane.f32.xlu1 %v3049_v22  ;;  %v1597_v10 = vpop.f32.mrf.mxu0 }
 0x3c2   : > { %v3726_v41 = vpop.xlane.xlu0 %2030  ;;  %v3728_v46 = vpop.xlane.xlu1 %2040 }
 0x3c3   : > { %4850 = vst [vmem:[#allocation28_spill] sm:$0xff] %v3726_v41  ;;  %4851 = vst [vmem:[#allocation29_spill] sm:$0xff] %v3728_v46 }
 0x3c5   : > { %2102 = vmax.xlane.f32.xlu0 %v1840_v49  ;;  %1972 = vmax.xlane.f32.xlu1 %v1581_v27  ;;  %v3054_v49 = vpop.f32.mrf.mxu0 }
 0x3c6   : > { %v3730_v57 = vpop.xlane.xlu1 %1900  ;;  %v3732_v58 = vpop.xlane.xlu0 %1906 }
 0x3c9   : > { %1978 = vmax.xlane.f32.xlu0 %v3050_v40  ;;  %1984 = vmax.xlane.f32.xlu1 %v3053_v1  ;;  %v1600_v40 = vpop.f32.mrf.mxu0 }
 0x3ca   : > { %v3734_v2 = vpop.xlane.xlu1 %2036  ;;  %v3736_v9 = vpop.xlane.xlu0 %2042 }
 0x3cb   : > { %4852 = vst [vmem:[#allocation30_spill] sm:$0xff] %v3734_v2  ;;  %4853 = vst [vmem:[#allocation31_spill] sm:$0xff] %v3736_v9 }
 0x3cd   : > { %1974 = vmax.xlane.f32.xlu0 %v1584_v50  ;;  %1980 = vmax.xlane.f32.xlu1 %v1597_v10 }
 0x3ce   : > { %v3738_v22 = vpop.xlane.xlu0 %1902  ;;  %v3740_v17 = vpop.xlane.xlu1 %1912 }
 0x3d1   : > { %2104 = vmax.xlane.f32.xlu1 %v3113_v15  ;;  %1986 = vmax.xlane.f32.xlu0 %v3054_v49 }
 0x3d2   : > { %v3742_v27 = vpop.xlane.xlu0 %2038  ;;  %v3744_v46 = vpop.xlane.xlu1 %2048 }
 0x3d3   : > { %4854 = vst [vmem:[#allocation32_spill] sm:$0xff] %v3742_v27  ;;  %4855 = vst [vmem:[#allocation33_spill] sm:$0xff] %v3744_v46 }
 0x3d5   : > { %1982 = vmax.xlane.f32.xlu0 %v1600_v40 }
 0x3d6   : > { %v3746_v1 = vpop.xlane.xlu1 %1908  ;;  %v3748_v2 = vpop.xlane.xlu0 %1914 }
 0x3d9   : > { %2106 = vmax.xlane.f32.xlu0 %v3114_v33 }
 0x3da   : > { %v3750_v50 = vpop.xlane.xlu1 %2044  ;;  %v3752_v10 = vpop.xlane.xlu0 %2050 }
 0x3db   : > { %4856 = vst [vmem:[#allocation34_spill] sm:$0xff] %v3750_v50  ;;  %4857 = vst [vmem:[#allocation35_spill] sm:$0xff] %v3752_v10 }
 0x3de   : > { %v3754_v9 = vpop.xlane.xlu0 %1910  ;;  %v3756_v25 = vpop.xlane.xlu1 %1920 }
 0x3e2   : > { %v3758_v15 = vpop.xlane.xlu0 %2046  ;;  %v3760_v49 = vpop.xlane.xlu1 %2056 }
 0x3e3   : > { %4858 = vst [vmem:[#allocation36_spill] sm:$0xff] %v3758_v15  ;;  %4859 = vst [vmem:[#allocation37_spill] sm:$0xff] %v3760_v49 }
 0x3e6   : > { %v3762_v46 = vpop.xlane.xlu1 %1916  ;;  %v3764_v40 = vpop.xlane.xlu0 %1922 }
 0x3ea   : > { %v3766_v27 = vpop.xlane.xlu1 %2052  ;;  %v3768_v6 = vpop.xlane.xlu0 %2058 }
 0x3eb   : > { %4860 = vst [vmem:[#allocation38_spill] sm:$0xff] %v3766_v27  ;;  %4861 = vst [vmem:[#allocation39_spill] sm:$0xff] %v3768_v6 }
 0x3ee   : > { %v3770_v33 = vpop.xlane.xlu0 %1918  ;;  %v3772_v50 = vpop.xlane.xlu1 %1928 }
 0x3f2   : > { %v3774_v10 = vpop.xlane.xlu0 %2054  ;;  %v3776_v41 = vpop.xlane.xlu1 %2064 }
 0x3f3   : > { %4862 = vst [vmem:[#allocation40_spill] sm:$0xff] %v3774_v10  ;;  %4863 = vst [vmem:[#allocation41_spill] sm:$0xff] %v3776_v41 }
 0x3f6   : > { %v3778_v23 = vpop.xlane.xlu1 %1924  ;;  %v3780_v15 = vpop.xlane.xlu0 %1930 }
 0x3fa   : > { %v3782_v49 = vpop.xlane.xlu1 %2060  ;;  %v3784_v54 = vpop.xlane.xlu0 %2066 }
 0x3fb   : > { %4864 = vst [vmem:[#allocation42_spill] sm:$0xff] %v3782_v49  ;;  %4865 = vst [vmem:[#allocation43_spill] sm:$0xff] %v3784_v54 }
 0x3fe   : > { %v3786_v37 = vpop.xlane.xlu0 %1926  ;;  %v3788_v27 = vpop.xlane.xlu1 %1936 }
 0x402   : > { %v3790_v6 = vpop.xlane.xlu0 %2062  ;;  %v3792_v5 = vpop.xlane.xlu1 %2072 }
 0x403   : > { %4866 = vst [vmem:[#allocation44_spill] sm:$0xff] %v3790_v6  ;;  %4867 = vst [vmem:[#allocation45_spill] sm:$0xff] %v3792_v5 }
 0x406   : > { %v3794_v53 = vpop.xlane.xlu1 %1932  ;;  %v3796_v10 = vpop.xlane.xlu0 %1938 }
 0x40a   : > { %v3798_v41 = vpop.xlane.xlu1 %2068  ;;  %v3800_v20 = vpop.xlane.xlu0 %2074 }
 0x40b   : > { %4868 = vst [vmem:[#allocation46_spill] sm:$0xff] %v3798_v41  ;;  %4869 = vst [vmem:[#allocation47_spill] sm:$0xff] %v3800_v20 }
 0x40e   : > { %v3802_v21 = vpop.xlane.xlu0 %1934  ;;  %v3804_v49 = vpop.xlane.xlu1 %1944 }
 0x412   : > { %v3806_v54 = vpop.xlane.xlu0 %2070  ;;  %v3808_v36 = vpop.xlane.xlu1 %2080 }
 0x413   : > { %4870 = vst [vmem:[#allocation48_spill] sm:$0xff] %v3806_v54  ;;  %4871 = vst [vmem:[#allocation49_spill] sm:$0xff] %v3808_v36 }
 0x416   : > { %v3810_v26 = vpop.xlane.xlu1 %1940  ;;  %v3812_v6 = vpop.xlane.xlu0 %1946 }
 0x417   : > { %4872 = vst [vmem:[#allocation50_spill] sm:$0xff] %v3812_v6 }
 0x41a   : > { %v3814_v5 = vpop.xlane.xlu1 %2076  ;;  %v3816_v8 = vpop.xlane.xlu0 %2082 }
 0x41b   : > { %4873 = vst [vmem:[#allocation51_spill] sm:$0xff] %v3814_v5  ;;  %4874 = vst [vmem:[#allocation52_spill] sm:$0xff] %v3816_v8 }
 0x41e   : > { %v3818_v0 = vpop.xlane.xlu0 %1942  ;;  %v3820_v41 = vpop.xlane.xlu1 %1952 }
 0x41f   : > { %4875 = vst [vmem:[#allocation53_spill] sm:$0xff] %v3820_v41 }
 0x422   : > { %v3822_v20 = vpop.xlane.xlu0 %2078  ;;  %v3824_v16 = vpop.xlane.xlu1 %2088 }
 0x423   : > { %4876 = vst [vmem:[#allocation54_spill] sm:$0xff] %v3822_v20  ;;  %4877 = vst [vmem:[#allocation55_spill] sm:$0xff] %v3824_v16 }
 0x426   : > { %v3826_v7 = vpop.xlane.xlu1 %1948  ;;  %v3828_v54 = vpop.xlane.xlu0 %1954 }
 0x427   : > { %4878 = vst [vmem:[#allocation56_spill] sm:$0xff] %v3826_v7  ;;  %4879 = vst [vmem:[#allocation57_spill] sm:$0xff] %v3828_v54 }
 0x42a   : > { %v3830_v36 = vpop.xlane.xlu1 %2084  ;;  %v3832_v56 = vpop.xlane.xlu0 %2090 }
 0x42b   : > { %4880 = vst [vmem:[#allocation58_spill] sm:$0xff] %v3830_v36  ;;  %4881 = vst [vmem:[#allocation59_spill] sm:$0xff] %v3832_v56 }
 0x42e   : > { %v3834_v48 = vpop.xlane.xlu0 %1950  ;;  %v3836_v5 = vpop.xlane.xlu1 %1960 }
 0x42f   : > { %4882 = vst [vmem:[#allocation60_spill] sm:$0xff] %v3834_v48  ;;  %4883 = vst [vmem:[#allocation61_spill] sm:$0xff] %v3836_v5 }
 0x432   : > { %v3838_v8 = vpop.xlane.xlu0 %2086  ;;  %v3840_v63 = vpop.xlane.xlu1 %2096 }
 0x433   : > { %4884 = vst [vmem:[#allocation62_spill] sm:$0xff] %v3838_v8  ;;  %4885 = vst [vmem:[#allocation63_spill] sm:$0xff] %v3840_v63 }
 0x436   : > { %v3842_v55 = vpop.xlane.xlu1 %1956  ;;  %v3844_v20 = vpop.xlane.xlu0 %1962 }
 0x437   : > { %4886 = vst [vmem:[#allocation64_spill] sm:$0xff] %v3842_v55  ;;  %4887 = vst [vmem:[#allocation65_spill] sm:$0xff] %v3844_v20 }
 0x43a   : > { %v3846_v16 = vpop.xlane.xlu1 %2092  ;;  %v3848_v42 = vpop.xlane.xlu0 %2098 }
 0x43b   : > { %4888 = vst [vmem:[#allocation66_spill] sm:$0xff] %v3846_v16  ;;  %4889 = vst [vmem:[#allocation67_spill] sm:$0xff] %v3848_v42 }
 0x43e   : > { %v3850_v30 = vpop.xlane.xlu0 %1958  ;;  %v3852_v36 = vpop.xlane.xlu1 %1968 }
 0x43f   : > { %4890 = vst [vmem:[#allocation68_spill] sm:$0xff] %v3850_v30  ;;  %4891 = vst [vmem:[#allocation69_spill] sm:$0xff] %v3852_v36 }
 0x442   : > { %v3854_v56 = vpop.xlane.xlu0 %2094  ;;  %v3856_v47 = vpop.xlane.xlu1 %1964 }
 0x443   : > { %4892 = vst [vmem:[#allocation70_spill] sm:$0xff] %v3854_v56  ;;  %4893 = vst [vmem:[#allocation71_spill] sm:$0xff] %v3856_v47 }
 0x446   : > { %v3858_v34 = vpop.xlane.xlu1 %2100  ;;  %v3860_v8 = vpop.xlane.xlu0 %1970 }
 0x447   : > { %4894 = vst [vmem:[#allocation72_spill] sm:$0xff] %v3858_v34  ;;  %4895 = vst [vmem:[#allocation73_spill] sm:$0xff] %v3860_v8 }
 0x44a   : > { %v3862_v63 = vpop.xlane.xlu0 %1966  ;;  %v3864_v5 = vpop.xlane.xlu1 %1976 }
 0x44b   : > { %4896 = vst [vmem:[#allocation74_spill] sm:$0xff] %v3862_v63 }
 0x44e   : > { %v3866_v20 = vpop.xlane.xlu0 %2102  ;;  %v3868_v16 = vpop.xlane.xlu1 %1972 }
 0x44f   : > { %4897 = vst [vmem:[#allocation75_spill] sm:$0xff] %v3866_v20 }
 0x452   : > { %v3870_v42 = vpop.xlane.xlu0 %1978  ;;  %v3872_v30 = vpop.xlane.xlu1 %1984 }
 0x453   : > { %4898 = vst [vmem:[#allocation76_spill] sm:$0xff] %v3872_v30 }
 0x456   : > { %v3874_v36 = vpop.xlane.xlu0 %1974  ;;  %v3876_v56 = vpop.xlane.xlu1 %1980 }
 0x45a   : > { %v3878_v47 = vpop.xlane.xlu1 %2104  ;;  %v3880_v34 = vpop.xlane.xlu0 %1986 }
 0x45b   : > { %4899 = vst [vmem:[#allocation77_spill] sm:$0xff] %v3878_v47  ;;  %4900 = vst [vmem:[#allocation78_spill] sm:$0xff] %v3880_v34 }
 0x45e   : > { %v3882_v8 = vpop.xlane.xlu0 %1982 }
 0x45f   : > { %4901 = vst [vmem:[#allocation79_spill] sm:$0xff] %v3882_v8  ;;  %2111 = sbr.rel (%p2844_p4) target bundleno = 1189 (0x4a5), region = 52 }
 0x462   : > { %v3884_v63 = vpop.xlane.xlu0 %2106 }
 0x463   : > { %4902 = vst [vmem:[#allocation80_spill] sm:$0xff] %v3884_v63 }
 0x464   : > { %vm2112_vm4 = vcmask 7168  }
 0x465   : > { %2113 = vst.msk [vmem:[%s3500_s19] sm:$0xff] %vm2112_vm4, %v3636_v35  ;;  %2114 = vst.msk [vmem:[%s3500_s19 + $0x8] sm:$0xff] %vm2112_vm4, %v3640_v39 }
 0x466   : > { %2115 = vst.msk [vmem:[%s3500_s19 + $0x10] sm:$0xff] %vm2112_vm4, %v3632_v31  ;;  %2116 = vst.msk [vmem:[%s3500_s19 + $0x18] sm:$0xff] %vm2112_vm4, %v3638_v38 }
 0x467   : > { %2117 = vst.msk [vmem:[%s3500_s19 + $0x20] sm:$0xff] %vm2112_vm4, %v3650_v51  ;;  %2118 = vst.msk [vmem:[%s3500_s19 + $0x28] sm:$0xff] %vm2112_vm4, %v3658_v59 }
 0x468   : > { %2119 = vst.msk [vmem:[%s3500_s19 + $0x30] sm:$0xff] %vm2112_vm4, %v3644_v43  ;;  %2120 = vst.msk [vmem:[%s3500_s19 + $0x38] sm:$0xff] %vm2112_vm4, %v3652_v52 }
 0x469   : > { %2121 = vst.msk [vmem:[%s3500_s19 + $0x40] sm:$0xff] %vm2112_vm4, %v3666_v3  ;;  %2122 = vst.msk [vmem:[%s3500_s19 + $0x48] sm:$0xff] %vm2112_vm4, %v3674_v12 }
 0x46a   : > { %2123 = vst.msk [vmem:[%s3500_s19 + $0x50] sm:$0xff] %vm2112_vm4, %v3660_v60  ;;  %2124 = vst.msk [vmem:[%s3500_s19 + $0x58] sm:$0xff] %vm2112_vm4, %v3668_v4 }
 0x46b   : > { %2125 = vst.msk [vmem:[%s3500_s19 + $0x60] sm:$0xff] %vm2112_vm4, %v3682_v19  ;;  %2126 = vst.msk [vmem:[%s3500_s19 + $0x68] sm:$0xff] %vm2112_vm4, %v3690_v18 }
 0x46c   : > { %2127 = vst.msk [vmem:[%s3500_s19 + $0x70] sm:$0xff] %vm2112_vm4, %v3676_v13  ;;  %2128 = vst.msk [vmem:[%s3500_s19 + $0x78] sm:$0xff] %vm2112_vm4, %v3684_v24 }
 0x46d   : > { %2129 = vst.msk [vmem:[%s3500_s19 + $0x80] sm:$0xff] %vm2112_vm4, %v3698_v44  ;;  %2130 = vst.msk [vmem:[%s3500_s19 + $0x88] sm:$0xff] %vm2112_vm4, %v3706_v61 }
 0x46e   : > { %2131 = vst.msk [vmem:[%s3500_s19 + $0x90] sm:$0xff] %vm2112_vm4, %v3692_v29  ;;  %2132 = vst.msk [vmem:[%s3500_s19 + $0x98] sm:$0xff] %vm2112_vm4, %v3700_v45 }
 0x46f   : > { %2133 = vst.msk [vmem:[%s3500_s19 + $0xa0] sm:$0xff] %vm2112_vm4, %v3714_v11  ;;  %2134 = vst.msk [vmem:[%s3500_s19 + $0xa8] sm:$0xff] %vm2112_vm4, %v3722_v28 }
 0x470   : > { %2135 = vst.msk [vmem:[%s3500_s19 + $0xb0] sm:$0xff] %vm2112_vm4, %v3708_v62  ;;  %2136 = vst.msk [vmem:[%s3500_s19 + $0xb8] sm:$0xff] %vm2112_vm4, %v3716_v14 }
 0x471   : > { %2137 = vst.msk [vmem:[%s3500_s19 + $0xc0] sm:$0xff] %vm2112_vm4, %v3730_v57  ;;  %2138 = vst.msk [vmem:[%s3500_s19 + $0xc8] sm:$0xff] %vm2112_vm4, %v3738_v22 }
 0x472   : > { %2139 = vst.msk [vmem:[%s3500_s19 + $0xd0] sm:$0xff] %vm2112_vm4, %v3724_v32  ;;  %2140 = vst.msk [vmem:[%s3500_s19 + $0xd8] sm:$0xff] %vm2112_vm4, %v3732_v58 }
 0x473   : > { %2141 = vst.msk [vmem:[%s3500_s19 + $0xe0] sm:$0xff] %vm2112_vm4, %v3746_v1  ;;  %2142 = vst.msk [vmem:[%s3500_s19 + $0xe8] sm:$0xff] %vm2112_vm4, %v3754_v9 }
 0x474   : > { %2143 = vst.msk [vmem:[%s3500_s19 + $0xf0] sm:$0xff] %vm2112_vm4, %v3740_v17  ;;  %2144 = vst.msk [vmem:[%s3500_s19 + $0xf8] sm:$0xff] %vm2112_vm4, %v3748_v2 }
 0x475   : > { %2145 = vst.msk [vmem:[%s3500_s19 + $0x100] sm:$0xff] %vm2112_vm4, %v3762_v46  ;;  %2146 = vst.msk [vmem:[%s3500_s19 + $0x108] sm:$0xff] %vm2112_vm4, %v3770_v33 }
 0x476   : > { %2147 = vst.msk [vmem:[%s3500_s19 + $0x110] sm:$0xff] %vm2112_vm4, %v3756_v25  ;;  %2148 = vst.msk [vmem:[%s3500_s19 + $0x118] sm:$0xff] %vm2112_vm4, %v3764_v40 }
 0x477   : > { %2149 = vst.msk [vmem:[%s3500_s19 + $0x120] sm:$0xff] %vm2112_vm4, %v3778_v23  ;;  %2150 = vst.msk [vmem:[%s3500_s19 + $0x128] sm:$0xff] %vm2112_vm4, %v3786_v37 }
 0x478   : > { %2151 = vst.msk [vmem:[%s3500_s19 + $0x130] sm:$0xff] %vm2112_vm4, %v3772_v50  ;;  %2152 = vst.msk [vmem:[%s3500_s19 + $0x138] sm:$0xff] %vm2112_vm4, %v3780_v15 }
 0x479   : > { %2153 = vst.msk [vmem:[%s3500_s19 + $0x140] sm:$0xff] %vm2112_vm4, %v3794_v53  ;;  %2154 = vst.msk [vmem:[%s3500_s19 + $0x148] sm:$0xff] %vm2112_vm4, %v3802_v21 }
 0x47a   : > { %2155 = vst.msk [vmem:[%s3500_s19 + $0x150] sm:$0xff] %vm2112_vm4, %v3788_v27  ;;  %2156 = vst.msk [vmem:[%s3500_s19 + $0x158] sm:$0xff] %vm2112_vm4, %v3796_v10 }
 0x47b   : > { %2157 = vst.msk [vmem:[%s3500_s19 + $0x160] sm:$0xff] %vm2112_vm4, %v3810_v26  ;;  %2158 = vst.msk [vmem:[%s3500_s19 + $0x168] sm:$0xff] %vm2112_vm4, %v3818_v0 }
 0x47c   : > { %2159 = vst.msk [vmem:[%s3500_s19 + $0x170] sm:$0xff] %vm2112_vm4, %v3804_v49  ;;  %2160 = vst.msk [vmem:[%s3500_s19 + $0x178] sm:$0xff] %vm2112_vm4, %v3812_v6  ;;  %v4903_v6 = vld [vmem:[#allocation68_spill] sm:$0xff] }
 0x47d   : > { %2161 = vst.msk [vmem:[%s3500_s19 + $0x180] sm:$0xff] %vm2112_vm4, %v3826_v7  ;;  %2162 = vst.msk [vmem:[%s3500_s19 + $0x188] sm:$0xff] %vm2112_vm4, %v3834_v48  ;;  %v4904_v7 = vld [vmem:[#allocation61_spill] sm:$0xff] }
 0x47e   : > { %2163 = vst.msk [vmem:[%s3500_s19 + $0x190] sm:$0xff] %vm2112_vm4, %v3820_v41  ;;  %2164 = vst.msk [vmem:[%s3500_s19 + $0x198] sm:$0xff] %vm2112_vm4, %v3828_v54  ;;  %v4905_v48 = vld [vmem:[#allocation65_spill] sm:$0xff]  ;;  %v4906_v41 = vld [vmem:[#allocation71_spill] sm:$0xff] }
 0x47f   : > { %2165 = vst.msk [vmem:[%s3500_s19 + $0x1a0] sm:$0xff] %vm2112_vm4, %v3842_v55  ;;  %2166 = vst.msk [vmem:[%s3500_s19 + $0x1a8] sm:$0xff] %vm2112_vm4, %v4903_v6  ;;  %v4907_v54 = vld [vmem:[#allocation74_spill] sm:$0xff]  ;;  %v4908_v55 = vld [vmem:[#allocation69_spill] sm:$0xff] }
 0x480   : > { %2167 = vst.msk [vmem:[%s3500_s19 + $0x1b0] sm:$0xff] %vm2112_vm4, %v4904_v7  ;;  %2168 = vst.msk [vmem:[%s3500_s19 + $0x1b8] sm:$0xff] %vm2112_vm4, %v4905_v48  ;;  %v4909_v6 = vld [vmem:[#allocation73_spill] sm:$0xff]  ;;  %v4910_v48 = vld [vmem:[#allocation6_spill] sm:$0xff] }
 0x481   : > { %2169 = vst.msk [vmem:[%s3500_s19 + $0x1c0] sm:$0xff] %vm2112_vm4, %v4906_v41  ;;  %2170 = vst.msk [vmem:[%s3500_s19 + $0x1c8] sm:$0xff] %vm2112_vm4, %v4907_v54  ;;  %v4912_v7 = vld [vmem:[#allocation5_spill] sm:$0xff]  ;;  %v4913_v54 = vld [vmem:[#allocation7_spill] sm:$0xff] }
 0x482   : > { %2171 = vst.msk [vmem:[%s3500_s19 + $0x1d0] sm:$0xff] %vm2112_vm4, %v4908_v55  ;;  %2172 = vst.msk [vmem:[%s3500_s19 + $0x1d8] sm:$0xff] %vm2112_vm4, %v4909_v6  ;;  %v4911_v55 = vld [vmem:[#allocation8_spill] sm:$0xff]  ;;  %v4914_v41 = vld [vmem:[#allocation10_spill] sm:$0xff] }
 0x483   : > { %2173 = vst.msk [vmem:[%s3500_s19 + $0x1e0] sm:$0xff] %vm2112_vm4, %v3868_v16  ;;  %2174 = vst.msk [vmem:[%s3500_s19 + $0x1e8] sm:$0xff] %vm2112_vm4, %v3874_v36  ;;  %v4915_v6 = vld [vmem:[#allocation12_spill] sm:$0xff] }
 0x484   : > { %2175 = vst.msk [vmem:[%s3500_s19 + $0x1f0] sm:$0xff] %vm2112_vm4, %v3864_v5  ;;  %2176 = vst.msk [vmem:[%s3500_s19 + $0x1f8] sm:$0xff] %vm2112_vm4, %v3870_v42 }
 0x485   : > { %2177 = vst.msk [vmem:[%s3500_s19 + $0x200] sm:$0xff] %vm2112_vm4, %v3876_v56  ;;  %2178 = vst.msk [vmem:[%s3500_s19 + $0x208] sm:$0xff] %vm2112_vm4, %v3882_v8 }
 0x486   : > { %2179 = vst.msk [vmem:[%s3500_s19 + $0x210] sm:$0xff] %vm2112_vm4, %v3872_v30  ;;  %2180 = vst.msk [vmem:[%s3500_s19 + $0x218] sm:$0xff] %vm2112_vm4, %v3880_v34  ;;  %v4957_v34 = vld [vmem:[#allocation52_spill] sm:$0xff]  ;;  %v4961_v30 = vld [vmem:[#allocation59_spill] sm:$0xff] }
 0x487   : > { %2181 = vst.msk [vmem:[%s3500_s19 + $0x220] sm:$0xff] %vm2112_vm4, %v4910_v48  ;;  %2182 = vst.msk [vmem:[%s3500_s19 + $0x228] sm:$0xff] %vm2112_vm4, %v4911_v55  ;;  %v4916_v48 = vld [vmem:[#allocation9_spill] sm:$0xff]  ;;  %v4917_v55 = vld [vmem:[#allocation11_spill] sm:$0xff] }
 0x488   : > { %2183 = vst.msk [vmem:[%s3500_s19 + $0x230] sm:$0xff] %vm2112_vm4, %v4912_v7  ;;  %2184 = vst.msk [vmem:[%s3500_s19 + $0x238] sm:$0xff] %vm2112_vm4, %v4913_v54  ;;  %v4918_v7 = vld [vmem:[#allocation14_spill] sm:$0xff]  ;;  %v4919_v54 = vld [vmem:[#allocation16_spill] sm:$0xff] }
 0x489   : > { %2185 = vst.msk [vmem:[%s3500_s19 + $0x240] sm:$0xff] %vm2112_vm4, %v4914_v41  ;;  %2186 = vst.msk [vmem:[%s3500_s19 + $0x248] sm:$0xff] %vm2112_vm4, %v4915_v6  ;;  %v4920_v41 = vld [vmem:[#allocation13_spill] sm:$0xff]  ;;  %v4921_v6 = vld [vmem:[#allocation15_spill] sm:$0xff] }
 0x48a   : > { %2187 = vst.msk [vmem:[%s3500_s19 + $0x250] sm:$0xff] %vm2112_vm4, %v4916_v48  ;;  %2188 = vst.msk [vmem:[%s3500_s19 + $0x258] sm:$0xff] %vm2112_vm4, %v4917_v55  ;;  %v4922_v48 = vld [vmem:[#allocation18_spill] sm:$0xff]  ;;  %v4923_v55 = vld [vmem:[#allocation20_spill] sm:$0xff] }
 0x48b   : > { %2189 = vst.msk [vmem:[%s3500_s19 + $0x260] sm:$0xff] %vm2112_vm4, %v4918_v7  ;;  %2190 = vst.msk [vmem:[%s3500_s19 + $0x268] sm:$0xff] %vm2112_vm4, %v4919_v54  ;;  %v4924_v7 = vld [vmem:[#allocation17_spill] sm:$0xff]  ;;  %v4925_v54 = vld [vmem:[#allocation19_spill] sm:$0xff] }
 0x48c   : > { %2191 = vst.msk [vmem:[%s3500_s19 + $0x270] sm:$0xff] %vm2112_vm4, %v4920_v41  ;;  %2192 = vst.msk [vmem:[%s3500_s19 + $0x278] sm:$0xff] %vm2112_vm4, %v4921_v6  ;;  %v4926_v41 = vld [vmem:[#allocation22_spill] sm:$0xff]  ;;  %v4927_v6 = vld [vmem:[#allocation24_spill] sm:$0xff] }
 0x48d   : > { %2193 = vst.msk [vmem:[%s3500_s19 + $0x280] sm:$0xff] %vm2112_vm4, %v4922_v48  ;;  %2194 = vst.msk [vmem:[%s3500_s19 + $0x288] sm:$0xff] %vm2112_vm4, %v4923_v55  ;;  %v4928_v48 = vld [vmem:[#allocation21_spill] sm:$0xff]  ;;  %v4929_v55 = vld [vmem:[#allocation23_spill] sm:$0xff] }
 0x48e   : > { %2195 = vst.msk [vmem:[%s3500_s19 + $0x290] sm:$0xff] %vm2112_vm4, %v4924_v7  ;;  %2196 = vst.msk [vmem:[%s3500_s19 + $0x298] sm:$0xff] %vm2112_vm4, %v4925_v54  ;;  %v4930_v7 = vld [vmem:[#allocation26_spill] sm:$0xff]  ;;  %v4931_v54 = vld [vmem:[#allocation28_spill] sm:$0xff] }
 0x48f   : > { %2197 = vst.msk [vmem:[%s3500_s19 + $0x2a0] sm:$0xff] %vm2112_vm4, %v4926_v41  ;;  %2198 = vst.msk [vmem:[%s3500_s19 + $0x2a8] sm:$0xff] %vm2112_vm4, %v4927_v6  ;;  %v4932_v41 = vld [vmem:[#allocation25_spill] sm:$0xff]  ;;  %v4933_v6 = vld [vmem:[#allocation27_spill] sm:$0xff] }
 0x490   : > { %2199 = vst.msk [vmem:[%s3500_s19 + $0x2b0] sm:$0xff] %vm2112_vm4, %v4928_v48  ;;  %2200 = vst.msk [vmem:[%s3500_s19 + $0x2b8] sm:$0xff] %vm2112_vm4, %v4929_v55  ;;  %v4934_v48 = vld [vmem:[#allocation30_spill] sm:$0xff]  ;;  %v4935_v55 = vld [vmem:[#allocation32_spill] sm:$0xff] }
 0x491   : > { %2201 = vst.msk [vmem:[%s3500_s19 + $0x2c0] sm:$0xff] %vm2112_vm4, %v4930_v7  ;;  %2202 = vst.msk [vmem:[%s3500_s19 + $0x2c8] sm:$0xff] %vm2112_vm4, %v4931_v54  ;;  %v4936_v7 = vld [vmem:[#allocation29_spill] sm:$0xff]  ;;  %v4937_v54 = vld [vmem:[#allocation31_spill] sm:$0xff] }
 0x492   : > { %2203 = vst.msk [vmem:[%s3500_s19 + $0x2d0] sm:$0xff] %vm2112_vm4, %v4932_v41  ;;  %2204 = vst.msk [vmem:[%s3500_s19 + $0x2d8] sm:$0xff] %vm2112_vm4, %v4933_v6  ;;  %v4938_v41 = vld [vmem:[#allocation34_spill] sm:$0xff]  ;;  %v4939_v6 = vld [vmem:[#allocation36_spill] sm:$0xff] }
 0x493   : > { %2205 = vst.msk [vmem:[%s3500_s19 + $0x2e0] sm:$0xff] %vm2112_vm4, %v4934_v48  ;;  %2206 = vst.msk [vmem:[%s3500_s19 + $0x2e8] sm:$0xff] %vm2112_vm4, %v4935_v55  ;;  %v4940_v48 = vld [vmem:[#allocation33_spill] sm:$0xff]  ;;  %v4941_v55 = vld [vmem:[#allocation35_spill] sm:$0xff] }
 0x494   : > { %2207 = vst.msk [vmem:[%s3500_s19 + $0x2f0] sm:$0xff] %vm2112_vm4, %v4936_v7  ;;  %2208 = vst.msk [vmem:[%s3500_s19 + $0x2f8] sm:$0xff] %vm2112_vm4, %v4937_v54  ;;  %v4942_v7 = vld [vmem:[#allocation38_spill] sm:$0xff]  ;;  %v4943_v54 = vld [vmem:[#allocation40_spill] sm:$0xff] }
 0x495   : > { %2209 = vst.msk [vmem:[%s3500_s19 + $0x300] sm:$0xff] %vm2112_vm4, %v4938_v41  ;;  %2210 = vst.msk [vmem:[%s3500_s19 + $0x308] sm:$0xff] %vm2112_vm4, %v4939_v6  ;;  %v4944_v41 = vld [vmem:[#allocation37_spill] sm:$0xff]  ;;  %v4945_v6 = vld [vmem:[#allocation39_spill] sm:$0xff] }
 0x496   : > { %2211 = vst.msk [vmem:[%s3500_s19 + $0x310] sm:$0xff] %vm2112_vm4, %v4940_v48  ;;  %2212 = vst.msk [vmem:[%s3500_s19 + $0x318] sm:$0xff] %vm2112_vm4, %v4941_v55  ;;  %v4946_v48 = vld [vmem:[#allocation42_spill] sm:$0xff]  ;;  %v4947_v55 = vld [vmem:[#allocation44_spill] sm:$0xff] }
 0x497   : > { %2213 = vst.msk [vmem:[%s3500_s19 + $0x320] sm:$0xff] %vm2112_vm4, %v4942_v7  ;;  %2214 = vst.msk [vmem:[%s3500_s19 + $0x328] sm:$0xff] %vm2112_vm4, %v4943_v54  ;;  %v4948_v7 = vld [vmem:[#allocation41_spill] sm:$0xff]  ;;  %v4949_v54 = vld [vmem:[#allocation43_spill] sm:$0xff] }
 0x498   : > { %2215 = vst.msk [vmem:[%s3500_s19 + $0x330] sm:$0xff] %vm2112_vm4, %v4944_v41  ;;  %2216 = vst.msk [vmem:[%s3500_s19 + $0x338] sm:$0xff] %vm2112_vm4, %v4945_v6  ;;  %v4950_v41 = vld [vmem:[#allocation46_spill] sm:$0xff]  ;;  %v4951_v6 = vld [vmem:[#allocation48_spill] sm:$0xff] }
 0x499   : > { %2217 = vst.msk [vmem:[%s3500_s19 + $0x340] sm:$0xff] %vm2112_vm4, %v4946_v48  ;;  %2218 = vst.msk [vmem:[%s3500_s19 + $0x348] sm:$0xff] %vm2112_vm4, %v4947_v55  ;;  %v4952_v48 = vld [vmem:[#allocation45_spill] sm:$0xff]  ;;  %v4953_v55 = vld [vmem:[#allocation47_spill] sm:$0xff] }
 0x49a   : > { %2219 = vst.msk [vmem:[%s3500_s19 + $0x350] sm:$0xff] %vm2112_vm4, %v4948_v7  ;;  %2220 = vst.msk [vmem:[%s3500_s19 + $0x358] sm:$0xff] %vm2112_vm4, %v4949_v54  ;;  %v4954_v7 = vld [vmem:[#allocation51_spill] sm:$0xff]  ;;  %v4955_v54 = vld [vmem:[#allocation54_spill] sm:$0xff] }
 0x49b   : > { %2221 = vst.msk [vmem:[%s3500_s19 + $0x360] sm:$0xff] %vm2112_vm4, %v4950_v41  ;;  %2222 = vst.msk [vmem:[%s3500_s19 + $0x368] sm:$0xff] %vm2112_vm4, %v4951_v6  ;;  %v4956_v41 = vld [vmem:[#allocation49_spill] sm:$0xff]  ;;  %v4958_v6 = vld [vmem:[#allocation58_spill] sm:$0xff] }
 0x49c   : > { %2223 = vst.msk [vmem:[%s3500_s19 + $0x370] sm:$0xff] %vm2112_vm4, %v4952_v48  ;;  %2224 = vst.msk [vmem:[%s3500_s19 + $0x378] sm:$0xff] %vm2112_vm4, %v4953_v55  ;;  %v4959_v48 = vld [vmem:[#allocation62_spill] sm:$0xff]  ;;  %v4960_v55 = vld [vmem:[#allocation55_spill] sm:$0xff] }
 0x49d   : > { %2225 = vst.msk [vmem:[%s3500_s19 + $0x380] sm:$0xff] %vm2112_vm4, %v4954_v7  ;;  %2226 = vst.msk [vmem:[%s3500_s19 + $0x388] sm:$0xff] %vm2112_vm4, %v4955_v54  ;;  %v4962_v7 = vld [vmem:[#allocation66_spill] sm:$0xff] }
 0x49e   : > { %2227 = vst.msk [vmem:[%s3500_s19 + $0x390] sm:$0xff] %vm2112_vm4, %v4956_v41  ;;  %2228 = vst.msk [vmem:[%s3500_s19 + $0x398] sm:$0xff] %vm2112_vm4, %v4957_v34  ;;  %v4963_v54 = vld [vmem:[#allocation70_spill] sm:$0xff]  ;;  %v4964_v41 = vld [vmem:[#allocation63_spill] sm:$0xff] }
 0x49f   : > { %2229 = vst.msk [vmem:[%s3500_s19 + $0x3a0] sm:$0xff] %vm2112_vm4, %v4958_v6  ;;  %2230 = vst.msk [vmem:[%s3500_s19 + $0x3a8] sm:$0xff] %vm2112_vm4, %v4959_v48  ;;  %v4965_v34 = vld [vmem:[#allocation67_spill] sm:$0xff]  ;;  %v4966_v6 = vld [vmem:[#allocation72_spill] sm:$0xff] }
 0x4a0   : > { %2231 = vst.msk [vmem:[%s3500_s19 + $0x3b0] sm:$0xff] %vm2112_vm4, %v4960_v55  ;;  %2232 = vst.msk [vmem:[%s3500_s19 + $0x3b8] sm:$0xff] %vm2112_vm4, %v4961_v30 }
 0x4a1   : > { %2233 = vst.msk [vmem:[%s3500_s19 + $0x3c0] sm:$0xff] %vm2112_vm4, %v4962_v7  ;;  %2234 = vst.msk [vmem:[%s3500_s19 + $0x3c8] sm:$0xff] %vm2112_vm4, %v4963_v54 }
 0x4a2   : > { %2235 = vst.msk [vmem:[%s3500_s19 + $0x3d0] sm:$0xff] %vm2112_vm4, %v4964_v41  ;;  %2236 = vst.msk [vmem:[%s3500_s19 + $0x3d8] sm:$0xff] %vm2112_vm4, %v4965_v34 }
 0x4a3   : > { %2237 = vst.msk [vmem:[%s3500_s19 + $0x3e0] sm:$0xff] %vm2112_vm4, %v4966_v6  ;;  %2238 = vst.msk [vmem:[%s3500_s19 + $0x3e8] sm:$0xff] %vm2112_vm4, %v3866_v20 }
 0x4a4   : > { %2239 = vst.msk [vmem:[%s3500_s19 + $0x3f0] sm:$0xff] %vm2112_vm4, %v3878_v47  ;;  %2240 = vst.msk [vmem:[%s3500_s19 + $0x3f8] sm:$0xff] %vm2112_vm4, %v3884_v63 }
 0x4a5 PF: > { %p2845_p7 = scmp.le.s32.totalorder %s3340_s21, 0 }
 0x4a7   : > { %2244 = sbr.rel (%p2845_p7) target bundleno = 1282 (0x502), region = 56 }
 0x4ac   : > { %v2245_v30 = vld [vmem:[%s3500_s19] sm:$0xff]  ;;  %vm2501_vm5 = vcmask 7168   ;;  %v2246_v48 = vld [vmem:[%s3500_s19 + $0x8] sm:$0xff]  ;;  %v2247_v55 = vld [vmem:[%s3500_s19 + $0x10] sm:$0xff] }
 0x4ad   : > { %v2373_v7 = vmax.f32 %v2245_v30, %v3636_v35  ;;  %v2374_v54 = vmax.f32 %v2246_v48, %v3640_v39  ;;  %v2375_v41 = vmax.f32 %v2247_v55, %v3632_v31  ;;  %v2248_v34 = vld [vmem:[%s3500_s19 + $0x18] sm:$0xff]  ;;  %v2249_v6 = vld [vmem:[%s3500_s19 + $0x20] sm:$0xff]  ;;  %v2250_v63 = vld [vmem:[%s3500_s19 + $0x28] sm:$0xff] }
 0x4ae   : > { %v2376_v47 = vmax.f32 %v2248_v34, %v3638_v38  ;;  %v2377_v20 = vmax.f32 %v2249_v6, %v3650_v51  ;;  %v2378_v8 = vmax.f32 %v2250_v63, %v3658_v59  ;;  %v2251_v35 = vld [vmem:[%s3500_s19 + $0x30] sm:$0xff]  ;;  %v2252_v30 = vld [vmem:[%s3500_s19 + $0x38] sm:$0xff]  ;;  %v2253_v39 = vld [vmem:[%s3500_s19 + $0x40] sm:$0xff] }
 0x4af   : > { %2502 = vst.msk [vmem:[%s3500_s19] sm:$0xff] %vm2501_vm5, %v2373_v7  ;;  %2503 = vst.msk [vmem:[%s3500_s19 + $0x8] sm:$0xff] %vm2501_vm5, %v2374_v54  ;;  %v2379_v31 = vmax.f32 %v2251_v35, %v3644_v43  ;;  %v2380_v38 = vmax.f32 %v2252_v30, %v3652_v52  ;;  %v2381_v51 = vmax.f32 %v2253_v39, %v3666_v3  ;;  %v2254_v59 = vld [vmem:[%s3500_s19 + $0x48] sm:$0xff]  ;;  %v2255_v63 = vld [vmem:[%s3500_s19 + $0x50] sm:$0xff] }
 0x4b0   : > { %2504 = vst.msk [vmem:[%s3500_s19 + $0x10] sm:$0xff] %vm2501_vm5, %v2375_v41  ;;  %v2256_v48 = vld [vmem:[%s3500_s19 + $0x58] sm:$0xff]  ;;  %2505 = vst.msk [vmem:[%s3500_s19 + $0x18] sm:$0xff] %vm2501_vm5, %v2376_v47  ;;  %v2382_v43 = vmax.f32 %v2254_v59, %v3674_v12  ;;  %v2383_v52 = vmax.f32 %v2255_v63, %v3660_v60  ;;  %v2257_v55 = vld [vmem:[%s3500_s19 + $0x60] sm:$0xff] }
 0x4b1   : > { %2506 = vst.msk [vmem:[%s3500_s19 + $0x20] sm:$0xff] %vm2501_vm5, %v2377_v20  ;;  %2507 = vst.msk [vmem:[%s3500_s19 + $0x28] sm:$0xff] %vm2501_vm5, %v2378_v8  ;;  %v2384_v3 = vmax.f32 %v2256_v48, %v3668_v4  ;;  %v2258_v7 = vld [vmem:[%s3500_s19 + $0x68] sm:$0xff]  ;;  %v2259_v54 = vld [vmem:[%s3500_s19 + $0x70] sm:$0xff]  ;;  %v2385_v47 = vmax.f32 %v2257_v55, %v3682_v19 }
 0x4b2   : > { %2508 = vst.msk [vmem:[%s3500_s19 + $0x30] sm:$0xff] %vm2501_vm5, %v2379_v31  ;;  %2509 = vst.msk [vmem:[%s3500_s19 + $0x38] sm:$0xff] %vm2501_vm5, %v2380_v38  ;;  %v2386_v60 = vmax.f32 %v2258_v7, %v3690_v18  ;;  %v2387_v4 = vmax.f32 %v2259_v54, %v3676_v13  ;;  %v2260_v8 = vld [vmem:[%s3500_s19 + $0x78] sm:$0xff]  ;;  %v2261_v12 = vld [vmem:[%s3500_s19 + $0x80] sm:$0xff] }
 0x4b3   : > { %2510 = vst.msk [vmem:[%s3500_s19 + $0x40] sm:$0xff] %vm2501_vm5, %v2381_v51  ;;  %v2262_v20 = vld [vmem:[%s3500_s19 + $0x88] sm:$0xff]  ;;  %2511 = vst.msk [vmem:[%s3500_s19 + $0x48] sm:$0xff] %vm2501_vm5, %v2382_v43  ;;  %v2388_v19 = vmax.f32 %v2260_v8, %v3684_v24  ;;  %v2389_v18 = vmax.f32 %v2261_v12, %v3698_v44  ;;  %v2263_v41 = vld [vmem:[%s3500_s19 + $0x90] sm:$0xff] }
 0x4b4   : > { %2512 = vst.msk [vmem:[%s3500_s19 + $0x50] sm:$0xff] %vm2501_vm5, %v2383_v52  ;;  %2513 = vst.msk [vmem:[%s3500_s19 + $0x58] sm:$0xff] %vm2501_vm5, %v2384_v3  ;;  %v2390_v13 = vmax.f32 %v2262_v20, %v3706_v61  ;;  %v2264_v34 = vld [vmem:[%s3500_s19 + $0x98] sm:$0xff]  ;;  %v2265_v6 = vld [vmem:[%s3500_s19 + $0xa0] sm:$0xff]  ;;  %v2391_v24 = vmax.f32 %v2263_v41, %v3692_v29 }
 0x4b5   : > { %2514 = vst.msk [vmem:[%s3500_s19 + $0x60] sm:$0xff] %vm2501_vm5, %v2385_v47  ;;  %2515 = vst.msk [vmem:[%s3500_s19 + $0x68] sm:$0xff] %vm2501_vm5, %v2386_v60  ;;  %v2392_v44 = vmax.f32 %v2264_v34, %v3700_v45  ;;  %v2393_v61 = vmax.f32 %v2265_v6, %v3714_v11  ;;  %v2266_v35 = vld [vmem:[%s3500_s19 + $0xa8] sm:$0xff]  ;;  %v2267_v30 = vld [vmem:[%s3500_s19 + $0xb0] sm:$0xff] }
 0x4b6   : > { %2516 = vst.msk [vmem:[%s3500_s19 + $0x70] sm:$0xff] %vm2501_vm5, %v2387_v4  ;;  %v2268_v39 = vld [vmem:[%s3500_s19 + $0xb8] sm:$0xff]  ;;  %2517 = vst.msk [vmem:[%s3500_s19 + $0x78] sm:$0xff] %vm2501_vm5, %v2388_v19  ;;  %v2394_v29 = vmax.f32 %v2266_v35, %v3722_v28  ;;  %v2395_v45 = vmax.f32 %v2267_v30, %v3708_v62  ;;  %v2269_v31 = vld [vmem:[%s3500_s19 + $0xc0] sm:$0xff] }
 0x4b7   : > { %2518 = vst.msk [vmem:[%s3500_s19 + $0x80] sm:$0xff] %vm2501_vm5, %v2389_v18  ;;  %2519 = vst.msk [vmem:[%s3500_s19 + $0x88] sm:$0xff] %vm2501_vm5, %v2390_v13  ;;  %v2396_v11 = vmax.f32 %v2268_v39, %v3716_v14  ;;  %v2270_v38 = vld [vmem:[%s3500_s19 + $0xc8] sm:$0xff]  ;;  %v2271_v51 = vld [vmem:[%s3500_s19 + $0xd0] sm:$0xff]  ;;  %v2397_v28 = vmax.f32 %v2269_v31, %v3730_v57 }
 0x4b8   : > { %2520 = vst.msk [vmem:[%s3500_s19 + $0x90] sm:$0xff] %vm2501_vm5, %v2391_v24  ;;  %2521 = vst.msk [vmem:[%s3500_s19 + $0x98] sm:$0xff] %vm2501_vm5, %v2392_v44  ;;  %v2398_v62 = vmax.f32 %v2270_v38, %v3738_v22  ;;  %v2399_v14 = vmax.f32 %v2271_v51, %v3724_v32  ;;  %v2272_v59 = vld [vmem:[%s3500_s19 + $0xd8] sm:$0xff]  ;;  %v2273_v63 = vld [vmem:[%s3500_s19 + $0xe0] sm:$0xff] }
 0x4b9   : > { %2522 = vst.msk [vmem:[%s3500_s19 + $0xa0] sm:$0xff] %vm2501_vm5, %v2393_v61  ;;  %v2274_v48 = vld [vmem:[%s3500_s19 + $0xe8] sm:$0xff]  ;;  %2523 = vst.msk [vmem:[%s3500_s19 + $0xa8] sm:$0xff] %vm2501_vm5, %v2394_v29  ;;  %v2400_v57 = vmax.f32 %v2272_v59, %v3732_v58  ;;  %v2401_v22 = vmax.f32 %v2273_v63, %v3746_v1  ;;  %v2275_v43 = vld [vmem:[%s3500_s19 + $0xf0] sm:$0xff] }
 0x4ba   : > { %2524 = vst.msk [vmem:[%s3500_s19 + $0xb0] sm:$0xff] %vm2501_vm5, %v2395_v45  ;;  %2525 = vst.msk [vmem:[%s3500_s19 + $0xb8] sm:$0xff] %vm2501_vm5, %v2396_v11  ;;  %v2402_v32 = vmax.f32 %v2274_v48, %v3754_v9  ;;  %v2276_v52 = vld [vmem:[%s3500_s19 + $0xf8] sm:$0xff]  ;;  %v2277_v3 = vld [vmem:[%s3500_s19 + $0x100] sm:$0xff]  ;;  %v2403_v58 = vmax.f32 %v2275_v43, %v3740_v17 }
 0x4bb   : > { %2526 = vst.msk [vmem:[%s3500_s19 + $0xc0] sm:$0xff] %vm2501_vm5, %v2397_v28  ;;  %2527 = vst.msk [vmem:[%s3500_s19 + $0xc8] sm:$0xff] %vm2501_vm5, %v2398_v62  ;;  %v2404_v1 = vmax.f32 %v2276_v52, %v3748_v2  ;;  %v2405_v9 = vmax.f32 %v2277_v3, %v3762_v46  ;;  %v2278_v55 = vld [vmem:[%s3500_s19 + $0x108] sm:$0xff]  ;;  %v2279_v7 = vld [vmem:[%s3500_s19 + $0x110] sm:$0xff] }
 0x4bc   : > { %2528 = vst.msk [vmem:[%s3500_s19 + $0xd0] sm:$0xff] %vm2501_vm5, %v2399_v14  ;;  %v2280_v54 = vld [vmem:[%s3500_s19 + $0x118] sm:$0xff]  ;;  %2529 = vst.msk [vmem:[%s3500_s19 + $0xd8] sm:$0xff] %vm2501_vm5, %v2400_v57  ;;  %v2406_v17 = vmax.f32 %v2278_v55, %v3770_v33  ;;  %v2407_v2 = vmax.f32 %v2279_v7, %v3756_v25  ;;  %v2281_v47 = vld [vmem:[%s3500_s19 + $0x120] sm:$0xff] }
 0x4bd   : > { %2530 = vst.msk [vmem:[%s3500_s19 + $0xe0] sm:$0xff] %vm2501_vm5, %v2401_v22  ;;  %2531 = vst.msk [vmem:[%s3500_s19 + $0xe8] sm:$0xff] %vm2501_vm5, %v2402_v32  ;;  %v2408_v46 = vmax.f32 %v2280_v54, %v3764_v40  ;;  %v2282_v60 = vld [vmem:[%s3500_s19 + $0x128] sm:$0xff]  ;;  %v2283_v4 = vld [vmem:[%s3500_s19 + $0x130] sm:$0xff]  ;;  %v2409_v33 = vmax.f32 %v2281_v47, %v3778_v23 }
 0x4be   : > { %2532 = vst.msk [vmem:[%s3500_s19 + $0xf0] sm:$0xff] %vm2501_vm5, %v2403_v58  ;;  %2533 = vst.msk [vmem:[%s3500_s19 + $0xf8] sm:$0xff] %vm2501_vm5, %v2404_v1  ;;  %v2410_v25 = vmax.f32 %v2282_v60, %v3786_v37  ;;  %v2411_v40 = vmax.f32 %v2283_v4, %v3772_v50  ;;  %v2284_v8 = vld [vmem:[%s3500_s19 + $0x138] sm:$0xff]  ;;  %v2285_v12 = vld [vmem:[%s3500_s19 + $0x140] sm:$0xff] }
 0x4bf   : > { %2534 = vst.msk [vmem:[%s3500_s19 + $0x100] sm:$0xff] %vm2501_vm5, %v2405_v9  ;;  %v2286_v20 = vld [vmem:[%s3500_s19 + $0x148] sm:$0xff]  ;;  %2535 = vst.msk [vmem:[%s3500_s19 + $0x108] sm:$0xff] %vm2501_vm5, %v2406_v17  ;;  %v2412_v23 = vmax.f32 %v2284_v8, %v3780_v15  ;;  %v2413_v37 = vmax.f32 %v2285_v12, %v3794_v53  ;;  %v2287_v19 = vld [vmem:[%s3500_s19 + $0x150] sm:$0xff] }
 0x4c0   : > { %2536 = vst.msk [vmem:[%s3500_s19 + $0x110] sm:$0xff] %vm2501_vm5, %v2407_v2  ;;  %2537 = vst.msk [vmem:[%s3500_s19 + $0x118] sm:$0xff] %vm2501_vm5, %v2408_v46  ;;  %v2414_v50 = vmax.f32 %v2286_v20, %v3802_v21  ;;  %v2288_v18 = vld [vmem:[%s3500_s19 + $0x158] sm:$0xff]  ;;  %v2289_v13 = vld [vmem:[%s3500_s19 + $0x160] sm:$0xff]  ;;  %v2415_v15 = vmax.f32 %v2287_v19, %v3788_v27 }
 0x4c1   : > { %2538 = vst.msk [vmem:[%s3500_s19 + $0x120] sm:$0xff] %vm2501_vm5, %v2409_v33  ;;  %2539 = vst.msk [vmem:[%s3500_s19 + $0x128] sm:$0xff] %vm2501_vm5, %v2410_v25  ;;  %v2416_v53 = vmax.f32 %v2288_v18, %v3796_v10  ;;  %v2417_v21 = vmax.f32 %v2289_v13, %v3810_v26  ;;  %v2290_v41 = vld [vmem:[%s3500_s19 + $0x168] sm:$0xff]  ;;  %v2291_v34 = vld [vmem:[%s3500_s19 + $0x170] sm:$0xff] }
 0x4c2   : > { %2540 = vst.msk [vmem:[%s3500_s19 + $0x130] sm:$0xff] %vm2501_vm5, %v2411_v40  ;;  %v2292_v6 = vld [vmem:[%s3500_s19 + $0x178] sm:$0xff]  ;;  %2541 = vst.msk [vmem:[%s3500_s19 + $0x138] sm:$0xff] %vm2501_vm5, %v2412_v23  ;;  %v2418_v27 = vmax.f32 %v2290_v41, %v3818_v0  ;;  %v2419_v10 = vmax.f32 %v2291_v34, %v3804_v49  ;;  %v4967_v24 = vld [vmem:[#allocation50_spill] sm:$0xff] }
 0x4c3   : > { %2542 = vst.msk [vmem:[%s3500_s19 + $0x140] sm:$0xff] %vm2501_vm5, %v2413_v37  ;;  %2543 = vst.msk [vmem:[%s3500_s19 + $0x148] sm:$0xff] %vm2501_vm5, %v2414_v50  ;;  %v2420_v26 = vmax.f32 %v2292_v6, %v4967_v24  ;;  %v2293_v44 = vld [vmem:[%s3500_s19 + $0x180] sm:$0xff]  ;;  %v2294_v61 = vld [vmem:[%s3500_s19 + $0x188] sm:$0xff] }
 0x4c4   : > { %v2295_v35 = vld [vmem:[%s3500_s19 + $0x190] sm:$0xff]  ;;  %2544 = vst.msk [vmem:[%s3500_s19 + $0x150] sm:$0xff] %vm2501_vm5, %v2415_v15  ;;  %2545 = vst.msk [vmem:[%s3500_s19 + $0x158] sm:$0xff] %vm2501_vm5, %v2416_v53  ;;  %v4968_v30 = vld [vmem:[#allocation56_spill] sm:$0xff] }
 0x4c5   : > { %2546 = vst.msk [vmem:[%s3500_s19 + $0x160] sm:$0xff] %vm2501_vm5, %v2417_v21  ;;  %v2421_v0 = vmax.f32 %v2293_v44, %v4968_v30  ;;  %v4969_v39 = vld [vmem:[#allocation60_spill] sm:$0xff]  ;;  %v4970_v29 = vld [vmem:[#allocation53_spill] sm:$0xff]  ;;  %v2298_v38 = vld [vmem:[%s3500_s19 + $0x1a8] sm:$0xff] }
 0x4c6   : > { %v2422_v49 = vmax.f32 %v2294_v61, %v4969_v39  ;;  %v2423_v45 = vmax.f32 %v2295_v35, %v4970_v29  ;;  %v2296_v11 = vld [vmem:[%s3500_s19 + $0x198] sm:$0xff]  ;;  %v2297_v31 = vld [vmem:[%s3500_s19 + $0x1a0] sm:$0xff]  ;;  %2547 = vst.msk [vmem:[%s3500_s19 + $0x168] sm:$0xff] %vm2501_vm5, %v2418_v27  ;;  %2548 = vst.msk [vmem:[%s3500_s19 + $0x170] sm:$0xff] %vm2501_vm5, %v2419_v10 }
 0x4c7   : > { %2549 = vst.msk [vmem:[%s3500_s19 + $0x178] sm:$0xff] %vm2501_vm5, %v2420_v26  ;;  %v4971_v51 = vld [vmem:[#allocation57_spill] sm:$0xff]  ;;  %v4972_v62 = vld [vmem:[#allocation64_spill] sm:$0xff]  ;;  %v2299_v48 = vld [vmem:[%s3500_s19 + $0x1b0] sm:$0xff] }
 0x4c8   : > { %v2424_v28 = vmax.f32 %v2296_v11, %v4971_v51  ;;  %v2425_v14 = vmax.f32 %v2297_v31, %v4972_v62  ;;  %v4973_v59 = vld [vmem:[#allocation68_spill] sm:$0xff]  ;;  %v2301_v22 = vld [vmem:[%s3500_s19 + $0x1c0] sm:$0xff]  ;;  %2550 = vst.msk [vmem:[%s3500_s19 + $0x180] sm:$0xff] %vm2501_vm5, %v2421_v0  ;;  %2551 = vst.msk [vmem:[%s3500_s19 + $0x188] sm:$0xff] %vm2501_vm5, %v2422_v49 }
 0x4c9   : > { %v2426_v63 = vmax.f32 %v2298_v38, %v4973_v59  ;;  %v2300_v57 = vld [vmem:[%s3500_s19 + $0x1b8] sm:$0xff]  ;;  %2552 = vst.msk [vmem:[%s3500_s19 + $0x190] sm:$0xff] %vm2501_vm5, %v2423_v45  ;;  %v4974_v32 = vld [vmem:[#allocation61_spill] sm:$0xff]  ;;  %v4976_v58 = vld [vmem:[#allocation71_spill] sm:$0xff] }
 0x4ca   : > { %v2427_v43 = vmax.f32 %v2299_v48, %v4974_v32  ;;  %v4975_v52 = vld [vmem:[#allocation65_spill] sm:$0xff]  ;;  %v2429_v1 = vmax.f32 %v2301_v22, %v4976_v58  ;;  %v2302_v9 = vld [vmem:[%s3500_s19 + $0x1c8] sm:$0xff]  ;;  %v2303_v55 = vld [vmem:[%s3500_s19 + $0x1d0] sm:$0xff]  ;;  %2553 = vst.msk [vmem:[%s3500_s19 + $0x198] sm:$0xff] %vm2501_vm5, %v2424_v28 }
 0x4cb   : > { %v2428_v3 = vmax.f32 %v2300_v57, %v4975_v52  ;;  %v2304_v7 = vld [vmem:[%s3500_s19 + $0x1d8] sm:$0xff]  ;;  %2554 = vst.msk [vmem:[%s3500_s19 + $0x1a0] sm:$0xff] %vm2501_vm5, %v2425_v14  ;;  %2555 = vst.msk [vmem:[%s3500_s19 + $0x1a8] sm:$0xff] %vm2501_vm5, %v2426_v63  ;;  %v4977_v54 = vld [vmem:[#allocation74_spill] sm:$0xff] }
 0x4cc   : > { %v2430_v17 = vmax.f32 %v2302_v9, %v4977_v54  ;;  %v4978_v2 = vld [vmem:[#allocation69_spill] sm:$0xff]  ;;  %v2306_v33 = vld [vmem:[%s3500_s19 + $0x1e8] sm:$0xff]  ;;  %v2307_v25 = vld [vmem:[%s3500_s19 + $0x1f0] sm:$0xff]  ;;  %2556 = vst.msk [vmem:[%s3500_s19 + $0x1b0] sm:$0xff] %vm2501_vm5, %v2427_v43 }
 0x4cd   : > { %v2431_v46 = vmax.f32 %v2303_v55, %v4978_v2  ;;  %v4979_v47 = vld [vmem:[#allocation73_spill] sm:$0xff]  ;;  %2557 = vst.msk [vmem:[%s3500_s19 + $0x1b8] sm:$0xff] %vm2501_vm5, %v2428_v3  ;;  %2558 = vst.msk [vmem:[%s3500_s19 + $0x1c0] sm:$0xff] %vm2501_vm5, %v2429_v1  ;;  %v2434_v8 = vmax.f32 %v2306_v33, %v3874_v36  ;;  %v2435_v12 = vmax.f32 %v2307_v25, %v3864_v5  ;;  %v2308_v20 = vld [vmem:[%s3500_s19 + $0x1f8] sm:$0xff] }
 0x4ce   : > { %v2432_v60 = vmax.f32 %v2304_v7, %v4979_v47  ;;  %v2305_v4 = vld [vmem:[%s3500_s19 + $0x1e0] sm:$0xff]  ;;  %v2310_v37 = vld [vmem:[%s3500_s19 + $0x208] sm:$0xff]  ;;  %2559 = vst.msk [vmem:[%s3500_s19 + $0x1c8] sm:$0xff] %vm2501_vm5, %v2430_v17  ;;  %v4980_v50 = vld [vmem:[#allocation79_spill] sm:$0xff] }
 0x4cf   : > { %v2433_v40 = vmax.f32 %v2305_v4, %v3868_v16  ;;  %v2309_v23 = vld [vmem:[%s3500_s19 + $0x200] sm:$0xff]  ;;  %2560 = vst.msk [vmem:[%s3500_s19 + $0x1d0] sm:$0xff] %vm2501_vm5, %v2431_v46  ;;  %v2436_v16 = vmax.f32 %v2308_v20, %v3870_v42  ;;  %v2438_v5 = vmax.f32 %v2310_v37, %v4980_v50  ;;  %v2311_v19 = vld [vmem:[%s3500_s19 + $0x210] sm:$0xff]  ;;  %v2312_v18 = vld [vmem:[%s3500_s19 + $0x218] sm:$0xff] }
 0x4d0   : > { %2561 = vst.msk [vmem:[%s3500_s19 + $0x1d8] sm:$0xff] %vm2501_vm5, %v2432_v60  ;;  %v2437_v36 = vmax.f32 %v2309_v23, %v3876_v56  ;;  %v2313_v13 = vld [vmem:[%s3500_s19 + $0x220] sm:$0xff]  ;;  %2563 = vst.msk [vmem:[%s3500_s19 + $0x1e8] sm:$0xff] %vm2501_vm5, %v2434_v8  ;;  %v4981_v15 = vld [vmem:[#allocation76_spill] sm:$0xff] }
 0x4d1   : > { %2562 = vst.msk [vmem:[%s3500_s19 + $0x1e0] sm:$0xff] %vm2501_vm5, %v2433_v40  ;;  %2564 = vst.msk [vmem:[%s3500_s19 + $0x1f0] sm:$0xff] %vm2501_vm5, %v2435_v12  ;;  %v2439_v42 = vmax.f32 %v2311_v19, %v4981_v15  ;;  %v4982_v53 = vld [vmem:[#allocation78_spill] sm:$0xff]  ;;  %v2315_v6 = vld [vmem:[%s3500_s19 + $0x230] sm:$0xff] }
 0x4d2   : > { %v2440_v56 = vmax.f32 %v2312_v18, %v4982_v53  ;;  %v4983_v21 = vld [vmem:[#allocation6_spill] sm:$0xff]  ;;  %v2316_v27 = vld [vmem:[%s3500_s19 + $0x238] sm:$0xff]  ;;  %2565 = vst.msk [vmem:[%s3500_s19 + $0x1f8] sm:$0xff] %vm2501_vm5, %v2436_v16  ;;  %2566 = vst.msk [vmem:[%s3500_s19 + $0x200] sm:$0xff] %vm2501_vm5, %v2437_v36 }
 0x4d3   : > { %v2441_v41 = vmax.f32 %v2313_v13, %v4983_v21  ;;  %v2314_v34 = vld [vmem:[%s3500_s19 + $0x228] sm:$0xff]  ;;  %2567 = vst.msk [vmem:[%s3500_s19 + $0x208] sm:$0xff] %vm2501_vm5, %v2438_v5  ;;  %v4984_v10 = vld [vmem:[#allocation8_spill] sm:$0xff]  ;;  %v4985_v26 = vld [vmem:[#allocation5_spill] sm:$0xff] }
 0x4d4   : > { %v2442_v24 = vmax.f32 %v2314_v34, %v4984_v10  ;;  %v2443_v44 = vmax.f32 %v2315_v6, %v4985_v26  ;;  %v4986_v61 = vld [vmem:[#allocation7_spill] sm:$0xff]  ;;  %v2317_v30 = vld [vmem:[%s3500_s19 + $0x240] sm:$0xff]  ;;  %v2318_v0 = vld [vmem:[%s3500_s19 + $0x248] sm:$0xff]  ;;  %2568 = vst.msk [vmem:[%s3500_s19 + $0x210] sm:$0xff] %vm2501_vm5, %v2439_v42 }
 0x4d5   : > { %v2444_v35 = vmax.f32 %v2316_v27, %v4986_v61  ;;  %v2319_v39 = vld [vmem:[%s3500_s19 + $0x250] sm:$0xff]  ;;  %2569 = vst.msk [vmem:[%s3500_s19 + $0x218] sm:$0xff] %vm2501_vm5, %v2440_v56  ;;  %2570 = vst.msk [vmem:[%s3500_s19 + $0x220] sm:$0xff] %vm2501_vm5, %v2441_v41  ;;  %v4987_v49 = vld [vmem:[#allocation10_spill] sm:$0xff] }
 0x4d6   : > { %v2445_v29 = vmax.f32 %v2317_v30, %v4987_v49  ;;  %v4988_v45 = vld [vmem:[#allocation12_spill] sm:$0xff]  ;;  %v4989_v31 = vld [vmem:[#allocation9_spill] sm:$0xff]  ;;  %v2322_v62 = vld [vmem:[%s3500_s19 + $0x268] sm:$0xff]  ;;  %2571 = vst.msk [vmem:[%s3500_s19 + $0x228] sm:$0xff] %vm2501_vm5, %v2442_v24 }
 0x4d7   : > { %v2446_v11 = vmax.f32 %v2318_v0, %v4988_v45  ;;  %v2447_v38 = vmax.f32 %v2319_v39, %v4989_v31  ;;  %v2320_v51 = vld [vmem:[%s3500_s19 + $0x258] sm:$0xff]  ;;  %v2321_v28 = vld [vmem:[%s3500_s19 + $0x260] sm:$0xff]  ;;  %2572 = vst.msk [vmem:[%s3500_s19 + $0x230] sm:$0xff] %vm2501_vm5, %v2443_v44  ;;  %2573 = vst.msk [vmem:[%s3500_s19 + $0x238] sm:$0xff] %vm2501_vm5, %v2444_v35 }
 0x4d8   : > { %v4990_v14 = vld [vmem:[#allocation11_spill] sm:$0xff]  ;;  %v4991_v63 = vld [vmem:[#allocation14_spill] sm:$0xff]  ;;  %v4992_v57 = vld [vmem:[#allocation16_spill] sm:$0xff]  ;;  %2574 = vst.msk [vmem:[%s3500_s19 + $0x240] sm:$0xff] %vm2501_vm5, %v2445_v29 }
 0x4d9   : > { %v2448_v59 = vmax.f32 %v2320_v51, %v4990_v14  ;;  %v2449_v48 = vmax.f32 %v2321_v28, %v4991_v63  ;;  %v2450_v22 = vmax.f32 %v2322_v62, %v4992_v57  ;;  %v2323_v32 = vld [vmem:[%s3500_s19 + $0x270] sm:$0xff]  ;;  %v2324_v43 = vld [vmem:[%s3500_s19 + $0x278] sm:$0xff]  ;;  %v2325_v52 = vld [vmem:[%s3500_s19 + $0x280] sm:$0xff]  ;;  %2575 = vst.msk [vmem:[%s3500_s19 + $0x248] sm:$0xff] %vm2501_vm5, %v2446_v11 }
 0x4da   : > { %2576 = vst.msk [vmem:[%s3500_s19 + $0x250] sm:$0xff] %vm2501_vm5, %v2447_v38  ;;  %v4993_v3 = vld [vmem:[#allocation13_spill] sm:$0xff]  ;;  %v4994_v1 = vld [vmem:[#allocation15_spill] sm:$0xff]  ;;  %v4995_v55 = vld [vmem:[#allocation18_spill] sm:$0xff] }
 0x4db   : > { %v2451_v58 = vmax.f32 %v2323_v32, %v4993_v3  ;;  %v2452_v9 = vmax.f32 %v2324_v43, %v4994_v1  ;;  %v2453_v7 = vmax.f32 %v2325_v52, %v4995_v55  ;;  %v2326_v54 = vld [vmem:[%s3500_s19 + $0x288] sm:$0xff]  ;;  %v2327_v17 = vld [vmem:[%s3500_s19 + $0x290] sm:$0xff]  ;;  %v2328_v2 = vld [vmem:[%s3500_s19 + $0x298] sm:$0xff]  ;;  %2577 = vst.msk [vmem:[%s3500_s19 + $0x258] sm:$0xff] %vm2501_vm5, %v2448_v59 }
 0x4dc   : > { %2578 = vst.msk [vmem:[%s3500_s19 + $0x260] sm:$0xff] %vm2501_vm5, %v2449_v48  ;;  %2579 = vst.msk [vmem:[%s3500_s19 + $0x268] sm:$0xff] %vm2501_vm5, %v2450_v22  ;;  %v4996_v46 = vld [vmem:[#allocation20_spill] sm:$0xff]  ;;  %v4997_v60 = vld [vmem:[#allocation17_spill] sm:$0xff] }
 0x4dd   : > { %v2454_v47 = vmax.f32 %v2326_v54, %v4996_v46  ;;  %v2455_v4 = vmax.f32 %v2327_v17, %v4997_v60  ;;  %v4998_v33 = vld [vmem:[#allocation19_spill] sm:$0xff]  ;;  %v2329_v40 = vld [vmem:[%s3500_s19 + $0x2a0] sm:$0xff]  ;;  %v2330_v8 = vld [vmem:[%s3500_s19 + $0x2a8] sm:$0xff]  ;;  %2580 = vst.msk [vmem:[%s3500_s19 + $0x270] sm:$0xff] %vm2501_vm5, %v2451_v58 }
 0x4de   : > { %v2456_v25 = vmax.f32 %v2328_v2, %v4998_v33  ;;  %v2331_v12 = vld [vmem:[%s3500_s19 + $0x2b0] sm:$0xff]  ;;  %2581 = vst.msk [vmem:[%s3500_s19 + $0x278] sm:$0xff] %vm2501_vm5, %v2452_v9  ;;  %2582 = vst.msk [vmem:[%s3500_s19 + $0x280] sm:$0xff] %vm2501_vm5, %v2453_v7  ;;  %v4999_v20 = vld [vmem:[#allocation22_spill] sm:$0xff] }
 0x4df   : > { %v2457_v23 = vmax.f32 %v2329_v40, %v4999_v20  ;;  %v5000_v37 = vld [vmem:[#allocation24_spill] sm:$0xff]  ;;  %v5001_v36 = vld [vmem:[#allocation21_spill] sm:$0xff]  ;;  %v2334_v18 = vld [vmem:[%s3500_s19 + $0x2c8] sm:$0xff]  ;;  %2583 = vst.msk [vmem:[%s3500_s19 + $0x288] sm:$0xff] %vm2501_vm5, %v2454_v47 }
 0x4e0   : > { %v2458_v16 = vmax.f32 %v2330_v8, %v5000_v37  ;;  %v2459_v50 = vmax.f32 %v2331_v12, %v5001_v36  ;;  %v2332_v5 = vld [vmem:[%s3500_s19 + $0x2b8] sm:$0xff]  ;;  %v2333_v19 = vld [vmem:[%s3500_s19 + $0x2c0] sm:$0xff]  ;;  %2584 = vst.msk [vmem:[%s3500_s19 + $0x290] sm:$0xff] %vm2501_vm5, %v2455_v4  ;;  %2585 = vst.msk [vmem:[%s3500_s19 + $0x298] sm:$0xff] %vm2501_vm5, %v2456_v25 }
 0x4e1   : > { %v5002_v13 = vld [vmem:[#allocation23_spill] sm:$0xff]  ;;  %v5003_v42 = vld [vmem:[#allocation26_spill] sm:$0xff]  ;;  %v5004_v56 = vld [vmem:[#allocation28_spill] sm:$0xff]  ;;  %2586 = vst.msk [vmem:[%s3500_s19 + $0x2a0] sm:$0xff] %vm2501_vm5, %v2457_v23 }
 0x4e2   : > { %v2460_v15 = vmax.f32 %v2332_v5, %v5002_v13  ;;  %v2461_v53 = vmax.f32 %v2333_v19, %v5003_v42  ;;  %v2462_v21 = vmax.f32 %v2334_v18, %v5004_v56  ;;  %v2335_v41 = vld [vmem:[%s3500_s19 + $0x2d0] sm:$0xff]  ;;  %v2336_v34 = vld [vmem:[%s3500_s19 + $0x2d8] sm:$0xff]  ;;  %v2337_v6 = vld [vmem:[%s3500_s19 + $0x2e0] sm:$0xff]  ;;  %2587 = vst.msk [vmem:[%s3500_s19 + $0x2a8] sm:$0xff] %vm2501_vm5, %v2458_v16 }
 0x4e3   : > { %2588 = vst.msk [vmem:[%s3500_s19 + $0x2b0] sm:$0xff] %vm2501_vm5, %v2459_v50  ;;  %v5005_v27 = vld [vmem:[#allocation25_spill] sm:$0xff]  ;;  %v5006_v24 = vld [vmem:[#allocation27_spill] sm:$0xff]  ;;  %v5007_v44 = vld [vmem:[#allocation30_spill] sm:$0xff] }
 0x4e4   : > { %v2463_v10 = vmax.f32 %v2335_v41, %v5005_v27  ;;  %v2464_v26 = vmax.f32 %v2336_v34, %v5006_v24  ;;  %v2465_v61 = vmax.f32 %v2337_v6, %v5007_v44  ;;  %v2338_v35 = vld [vmem:[%s3500_s19 + $0x2e8] sm:$0xff]  ;;  %v2339_v30 = vld [vmem:[%s3500_s19 + $0x2f0] sm:$0xff]  ;;  %v2340_v0 = vld [vmem:[%s3500_s19 + $0x2f8] sm:$0xff]  ;;  %2589 = vst.msk [vmem:[%s3500_s19 + $0x2b8] sm:$0xff] %vm2501_vm5, %v2460_v15 }
 0x4e5   : > { %2590 = vst.msk [vmem:[%s3500_s19 + $0x2c0] sm:$0xff] %vm2501_vm5, %v2461_v53  ;;  %2591 = vst.msk [vmem:[%s3500_s19 + $0x2c8] sm:$0xff] %vm2501_vm5, %v2462_v21  ;;  %v5008_v39 = vld [vmem:[#allocation32_spill] sm:$0xff]  ;;  %v5009_v29 = vld [vmem:[#allocation29_spill] sm:$0xff] }
 0x4e6   : > { %v2466_v49 = vmax.f32 %v2338_v35, %v5008_v39  ;;  %v2467_v45 = vmax.f32 %v2339_v30, %v5009_v29  ;;  %v5010_v11 = vld [vmem:[#allocation31_spill] sm:$0xff]  ;;  %v2341_v38 = vld [vmem:[%s3500_s19 + $0x300] sm:$0xff]  ;;  %v2342_v51 = vld [vmem:[%s3500_s19 + $0x308] sm:$0xff]  ;;  %2592 = vst.msk [vmem:[%s3500_s19 + $0x2d0] sm:$0xff] %vm2501_vm5, %v2463_v10 }
 0x4e7   : > { %v2468_v31 = vmax.f32 %v2340_v0, %v5010_v11  ;;  %v2343_v28 = vld [vmem:[%s3500_s19 + $0x310] sm:$0xff]  ;;  %2593 = vst.msk [vmem:[%s3500_s19 + $0x2d8] sm:$0xff] %vm2501_vm5, %v2464_v26  ;;  %2594 = vst.msk [vmem:[%s3500_s19 + $0x2e0] sm:$0xff] %vm2501_vm5, %v2465_v61  ;;  %v5011_v62 = vld [vmem:[#allocation34_spill] sm:$0xff] }
 0x4e8   : > { %v2469_v14 = vmax.f32 %v2341_v38, %v5011_v62  ;;  %v5012_v59 = vld [vmem:[#allocation36_spill] sm:$0xff]  ;;  %v5013_v48 = vld [vmem:[#allocation33_spill] sm:$0xff]  ;;  %v2346_v43 = vld [vmem:[%s3500_s19 + $0x328] sm:$0xff]  ;;  %2595 = vst.msk [vmem:[%s3500_s19 + $0x2e8] sm:$0xff] %vm2501_vm5, %v2466_v49 }
 0x4e9   : > { %v2470_v63 = vmax.f32 %v2342_v51, %v5012_v59  ;;  %v2471_v57 = vmax.f32 %v2343_v28, %v5013_v48  ;;  %v2344_v22 = vld [vmem:[%s3500_s19 + $0x318] sm:$0xff]  ;;  %v2345_v32 = vld [vmem:[%s3500_s19 + $0x320] sm:$0xff]  ;;  %2596 = vst.msk [vmem:[%s3500_s19 + $0x2f0] sm:$0xff] %vm2501_vm5, %v2467_v45  ;;  %2597 = vst.msk [vmem:[%s3500_s19 + $0x2f8] sm:$0xff] %vm2501_vm5, %v2468_v31 }
 0x4ea   : > { %v5014_v52 = vld [vmem:[#allocation35_spill] sm:$0xff]  ;;  %v5015_v58 = vld [vmem:[#allocation38_spill] sm:$0xff]  ;;  %v5016_v9 = vld [vmem:[#allocation40_spill] sm:$0xff]  ;;  %2598 = vst.msk [vmem:[%s3500_s19 + $0x300] sm:$0xff] %vm2501_vm5, %v2469_v14 }
 0x4eb   : > { %v2472_v3 = vmax.f32 %v2344_v22, %v5014_v52  ;;  %v2473_v1 = vmax.f32 %v2345_v32, %v5015_v58  ;;  %v2474_v55 = vmax.f32 %v2346_v43, %v5016_v9  ;;  %v2347_v7 = vld [vmem:[%s3500_s19 + $0x330] sm:$0xff]  ;;  %v2348_v54 = vld [vmem:[%s3500_s19 + $0x338] sm:$0xff]  ;;  %v2349_v17 = vld [vmem:[%s3500_s19 + $0x340] sm:$0xff]  ;;  %2599 = vst.msk [vmem:[%s3500_s19 + $0x308] sm:$0xff] %vm2501_vm5, %v2470_v63 }
 0x4ec   : > { %2600 = vst.msk [vmem:[%s3500_s19 + $0x310] sm:$0xff] %vm2501_vm5, %v2471_v57  ;;  %v5017_v2 = vld [vmem:[#allocation37_spill] sm:$0xff]  ;;  %v5018_v47 = vld [vmem:[#allocation39_spill] sm:$0xff]  ;;  %v5019_v4 = vld [vmem:[#allocation42_spill] sm:$0xff] }
 0x4ed   : > { %v2475_v46 = vmax.f32 %v2347_v7, %v5017_v2  ;;  %v2476_v60 = vmax.f32 %v2348_v54, %v5018_v47  ;;  %v2477_v33 = vmax.f32 %v2349_v17, %v5019_v4  ;;  %v2350_v25 = vld [vmem:[%s3500_s19 + $0x348] sm:$0xff]  ;;  %v2351_v40 = vld [vmem:[%s3500_s19 + $0x350] sm:$0xff]  ;;  %v2352_v8 = vld [vmem:[%s3500_s19 + $0x358] sm:$0xff]  ;;  %2601 = vst.msk [vmem:[%s3500_s19 + $0x318] sm:$0xff] %vm2501_vm5, %v2472_v3 }
 0x4ee   : > { %2602 = vst.msk [vmem:[%s3500_s19 + $0x320] sm:$0xff] %vm2501_vm5, %v2473_v1  ;;  %2603 = vst.msk [vmem:[%s3500_s19 + $0x328] sm:$0xff] %vm2501_vm5, %v2474_v55  ;;  %v5020_v12 = vld [vmem:[#allocation44_spill] sm:$0xff]  ;;  %v5021_v23 = vld [vmem:[#allocation41_spill] sm:$0xff] }
 0x4ef   : > { %v2478_v20 = vmax.f32 %v2350_v25, %v5020_v12  ;;  %v2479_v37 = vmax.f32 %v2351_v40, %v5021_v23  ;;  %v5022_v16 = vld [vmem:[#allocation43_spill] sm:$0xff]  ;;  %v2353_v50 = vld [vmem:[%s3500_s19 + $0x360] sm:$0xff]  ;;  %v2354_v5 = vld [vmem:[%s3500_s19 + $0x368] sm:$0xff]  ;;  %2604 = vst.msk [vmem:[%s3500_s19 + $0x330] sm:$0xff] %vm2501_vm5, %v2475_v46 }
 0x4f0   : > { %v2480_v36 = vmax.f32 %v2352_v8, %v5022_v16  ;;  %v2355_v19 = vld [vmem:[%s3500_s19 + $0x370] sm:$0xff]  ;;  %2605 = vst.msk [vmem:[%s3500_s19 + $0x338] sm:$0xff] %vm2501_vm5, %v2476_v60  ;;  %2606 = vst.msk [vmem:[%s3500_s19 + $0x340] sm:$0xff] %vm2501_vm5, %v2477_v33  ;;  %v5023_v18 = vld [vmem:[#allocation46_spill] sm:$0xff] }
 0x4f1   : > { %v2481_v13 = vmax.f32 %v2353_v50, %v5023_v18  ;;  %v5024_v15 = vld [vmem:[#allocation48_spill] sm:$0xff]  ;;  %v5025_v53 = vld [vmem:[#allocation45_spill] sm:$0xff]  ;;  %v2358_v34 = vld [vmem:[%s3500_s19 + $0x388] sm:$0xff]  ;;  %2607 = vst.msk [vmem:[%s3500_s19 + $0x348] sm:$0xff] %vm2501_vm5, %v2478_v20 }
 0x4f2   : > { %v2482_v42 = vmax.f32 %v2354_v5, %v5024_v15  ;;  %v2483_v56 = vmax.f32 %v2355_v19, %v5025_v53  ;;  %v2356_v21 = vld [vmem:[%s3500_s19 + $0x378] sm:$0xff]  ;;  %v2357_v41 = vld [vmem:[%s3500_s19 + $0x380] sm:$0xff]  ;;  %2608 = vst.msk [vmem:[%s3500_s19 + $0x350] sm:$0xff] %vm2501_vm5, %v2479_v37  ;;  %2609 = vst.msk [vmem:[%s3500_s19 + $0x358] sm:$0xff] %vm2501_vm5, %v2480_v36 }
 0x4f3   : > { %v5026_v6 = vld [vmem:[#allocation47_spill] sm:$0xff]  ;;  %v5028_v26 = vld [vmem:[#allocation54_spill] sm:$0xff]  ;;  %v2360_v35 = vld [vmem:[%s3500_s19 + $0x398] sm:$0xff]  ;;  %2610 = vst.msk [vmem:[%s3500_s19 + $0x360] sm:$0xff] %vm2501_vm5, %v2481_v13 }
 0x4f4   : > { %v2484_v27 = vmax.f32 %v2356_v21, %v5026_v6  ;;  %v5027_v10 = vld [vmem:[#allocation51_spill] sm:$0xff]  ;;  %v2486_v44 = vmax.f32 %v2358_v34, %v5028_v26  ;;  %v2361_v30 = vld [vmem:[%s3500_s19 + $0x3a0] sm:$0xff]  ;;  %2611 = vst.msk [vmem:[%s3500_s19 + $0x368] sm:$0xff] %vm2501_vm5, %v2482_v42  ;;  %2612 = vst.msk [vmem:[%s3500_s19 + $0x370] sm:$0xff] %vm2501_vm5, %v2483_v56 }
 0x4f5   : > { %v2485_v24 = vmax.f32 %v2357_v41, %v5027_v10  ;;  %v2359_v61 = vld [vmem:[%s3500_s19 + $0x390] sm:$0xff]  ;;  %v5029_v0 = vld [vmem:[#allocation49_spill] sm:$0xff]  ;;  %v5030_v49 = vld [vmem:[#allocation52_spill] sm:$0xff] }
 0x4f6   : > { %v2487_v39 = vmax.f32 %v2359_v61, %v5029_v0  ;;  %v2488_v29 = vmax.f32 %v2360_v35, %v5030_v49  ;;  %v5031_v45 = vld [vmem:[#allocation58_spill] sm:$0xff]  ;;  %v2363_v38 = vld [vmem:[%s3500_s19 + $0x3b0] sm:$0xff]  ;;  %v2364_v51 = vld [vmem:[%s3500_s19 + $0x3b8] sm:$0xff]  ;;  %2613 = vst.msk [vmem:[%s3500_s19 + $0x378] sm:$0xff] %vm2501_vm5, %v2484_v27 }
 0x4f7   : > { %v2489_v11 = vmax.f32 %v2361_v30, %v5031_v45  ;;  %v2362_v31 = vld [vmem:[%s3500_s19 + $0x3a8] sm:$0xff]  ;;  %2614 = vst.msk [vmem:[%s3500_s19 + $0x380] sm:$0xff] %vm2501_vm5, %v2485_v24  ;;  %2615 = vst.msk [vmem:[%s3500_s19 + $0x388] sm:$0xff] %vm2501_vm5, %v2486_v44  ;;  %v5033_v14 = vld [vmem:[#allocation55_spill] sm:$0xff] }
 0x4f8   : > { %v5032_v28 = vld [vmem:[#allocation62_spill] sm:$0xff]  ;;  %v2491_v59 = vmax.f32 %v2363_v38, %v5033_v14  ;;  %v5034_v63 = vld [vmem:[#allocation59_spill] sm:$0xff]  ;;  %v2365_v57 = vld [vmem:[%s3500_s19 + $0x3c0] sm:$0xff]  ;;  %2616 = vst.msk [vmem:[%s3500_s19 + $0x390] sm:$0xff] %vm2501_vm5, %v2487_v39 }
 0x4f9   : > { %v2490_v62 = vmax.f32 %v2362_v31, %v5032_v28  ;;  %v2492_v48 = vmax.f32 %v2364_v51, %v5034_v63  ;;  %v2366_v22 = vld [vmem:[%s3500_s19 + $0x3c8] sm:$0xff]  ;;  %v2367_v32 = vld [vmem:[%s3500_s19 + $0x3d0] sm:$0xff]  ;;  %2617 = vst.msk [vmem:[%s3500_s19 + $0x398] sm:$0xff] %vm2501_vm5, %v2488_v29  ;;  %2618 = vst.msk [vmem:[%s3500_s19 + $0x3a0] sm:$0xff] %vm2501_vm5, %v2489_v11 }
 0x4fa   : > { %v5035_v43 = vld [vmem:[#allocation66_spill] sm:$0xff]  ;;  %v5037_v1 = vld [vmem:[#allocation63_spill] sm:$0xff]  ;;  %v2368_v55 = vld [vmem:[%s3500_s19 + $0x3d8] sm:$0xff]  ;;  %2620 = vst.msk [vmem:[%s3500_s19 + $0x3b0] sm:$0xff] %vm2501_vm5, %v2491_v59 }
 0x4fb   : > { %v2493_v52 = vmax.f32 %v2365_v57, %v5035_v43  ;;  %v5036_v3 = vld [vmem:[#allocation70_spill] sm:$0xff]  ;;  %v2495_v9 = vmax.f32 %v2367_v32, %v5037_v1  ;;  %v2369_v7 = vld [vmem:[%s3500_s19 + $0x3e0] sm:$0xff]  ;;  %2619 = vst.msk [vmem:[%s3500_s19 + $0x3a8] sm:$0xff] %vm2501_vm5, %v2490_v62  ;;  %2621 = vst.msk [vmem:[%s3500_s19 + $0x3b8] sm:$0xff] %vm2501_vm5, %v2492_v48 }
 0x4fc   : > { %v2494_v58 = vmax.f32 %v2366_v22, %v5036_v3  ;;  %v2370_v54 = vld [vmem:[%s3500_s19 + $0x3e8] sm:$0xff]  ;;  %v5038_v17 = vld [vmem:[#allocation67_spill] sm:$0xff]  ;;  %v5039_v46 = vld [vmem:[#allocation72_spill] sm:$0xff] }
 0x4fd   : > { %v2496_v2 = vmax.f32 %v2368_v55, %v5038_v17  ;;  %v2497_v47 = vmax.f32 %v2369_v7, %v5039_v46  ;;  %v5040_v60 = vld [vmem:[#allocation75_spill] sm:$0xff]  ;;  %v2372_v25 = vld [vmem:[%s3500_s19 + $0x3f8] sm:$0xff]  ;;  %2622 = vst.msk [vmem:[%s3500_s19 + $0x3c0] sm:$0xff] %vm2501_vm5, %v2493_v52  ;;  %2624 = vst.msk [vmem:[%s3500_s19 + $0x3d0] sm:$0xff] %vm2501_vm5, %v2495_v9 }
 0x4fe   : > { %v2498_v4 = vmax.f32 %v2370_v54, %v5040_v60  ;;  %v2371_v33 = vld [vmem:[%s3500_s19 + $0x3f0] sm:$0xff]  ;;  %2623 = vst.msk [vmem:[%s3500_s19 + $0x3c8] sm:$0xff] %vm2501_vm5, %v2494_v58  ;;  %v5041_v40 = vld [vmem:[#allocation77_spill] sm:$0xff]  ;;  %v5042_v12 = vld [vmem:[#allocation80_spill] sm:$0xff] }
 0x4ff   : > { %v2499_v8 = vmax.f32 %v2371_v33, %v5041_v40  ;;  %v2500_v20 = vmax.f32 %v2372_v25, %v5042_v12  ;;  %2625 = vst.msk [vmem:[%s3500_s19 + $0x3d8] sm:$0xff] %vm2501_vm5, %v2496_v2  ;;  %2626 = vst.msk [vmem:[%s3500_s19 + $0x3e0] sm:$0xff] %vm2501_vm5, %v2497_v47 }
 0x500   : > { %2627 = vst.msk [vmem:[%s3500_s19 + $0x3e8] sm:$0xff] %vm2501_vm5, %v2498_v4 }
 0x501   : > { %2628 = vst.msk [vmem:[%s3500_s19 + $0x3f0] sm:$0xff] %vm2501_vm5, %v2499_v8  ;;  %2629 = vst.msk [vmem:[%s3500_s19 + $0x3f8] sm:$0xff] %vm2501_vm5, %v2500_v20 }
 0x502 PF: > { %s17_s27 = sadd.s32 1, %s3364_s27   ;;  %s5043_s21 = smov %s3352_s24 }
 0x503   : > { %p14_p8 = scmp.ge.s32.totalorder %s17_s27, 10   ;;  %s5044_s22 = smov %s3356_s25 }
 0x504   : > { %s5045_s23 = smov %s3360_s26  ;;  %s5046_s24 = smov %s5050_s29 }
 0x505   : > { %s5047_s25 = smov %s5054_s30  ;;  %s5048_s26 = smov %s5058_s7 }
 0x506   :  { %16 = sbr.rel (!%p14_p8) target bundleno = 4 (0x4), region = 87 }
 0x50b   :  { %2659 = vsyncpa [#allocation3], 1 }
 0x50c   :  { %2661 = vsyncpa [#allocation3 + $0x1], 1 }

</bundles_post_ra>
